<compile_context>
chip_gen: v6e
topology: v6e:2x2x1
jax: 0.10.0
libtpu: 0.0.40
codegen_flags: <defaults>
</compile_context>

<pallas_src>
import functools

import jax
import jax.numpy as jnp
from jax import lax
from jax.experimental import pallas as pl
from jax.experimental.pallas import tpu as pltpu

EPS = 1e-5          # nn.BatchNorm2d default
NEG_SLOPE = 0.01    # nn.LeakyReLU default


# ----------------------------------------------------------------------------
# Fully-fused kernel: (conv3x3 -> BN(train) -> LeakyReLU) x 2, all in VMEM
# ----------------------------------------------------------------------------
def _double_conv_kernel(x_ref, w1_ref, gb1_ref, w2_ref, gb2_ref, o_ref,
                        xpad_ref, y1pad_ref, stk1_ref, stk2_ref, *,
                        batch, width, n_pix):
    # x_ref   : (B, Cin, H*W)      f32
    # w1_ref  : (C1, 9*Cin)        bf16   k = tap*Cin + cin, tap = dy*3 + dx
    # gb1_ref : (C1, 2)            f32    [:,0]=gamma, [:,1]=beta
    # w2_ref  : (C2, 9*C1)         bf16
    # gb2_ref : (C2, 2)            f32
    # o_ref   : (B, C2, H*W)       f32
    # xpad_ref  : (B, Cin, Rpad)   f32 scratch  (Rpad = H*W + 2*(W+1))
    # y1pad_ref : (B, C1,  Rpad)   f32 scratch
    # stk1_ref  : (9*Cin, B*H*W)   f32 scratch  (im2col stack, block 1)
    # stk2_ref  : (9*C1,  B*H*W)   f32 scratch  (im2col stack, block 2)
    pad = width + 1
    cin = x_ref.shape[1]
    c1 = y1pad_ref.shape[1]

    # Masks computed once: output-pixel column within its row.
    col = lax.broadcasted_iota(jnp.int32, (1, n_pix), 1) % width
    not_left = col != 0
    not_right = col != (width - 1)

    def build_stack(src_ref, stk_ref, n_ch):
        # Pack the 9 shifted (border-masked) taps of every batch item into one
        # (9*n_ch, B*n_pix) operand: batch lives on the lane axis.
        for b in range(batch):
            for dy in range(3):
                for dx in range(3):
                    tap = dy * 3 + dx
                    off = dy * width + dx
                    xs = src_ref[b, :, off:off + n_pix]        # (n_ch, n_pix)
                    if dx == 0:
                        xs = jnp.where(not_left, xs, 0.0)
                    elif dx == 2:
                        xs = jnp.where(not_right, xs, 0.0)
                    stk_ref[tap * n_ch:(tap + 1) * n_ch,
                            b * n_pix:(b + 1) * n_pix] = xs

    def bn_lrelu(y, gb):
        # Exact training-mode BatchNorm over the whole batch (centered,
        # numerically stable) + LeakyReLU(0.01).
        mean = jnp.mean(y, axis=1, keepdims=True)
        var = jnp.mean(jnp.square(y - mean), axis=1, keepdims=True)  # biased
        scale = gb[:, 0:1] * lax.rsqrt(var + EPS)
        shift = gb[:, 1:2] - mean * scale
        z = y * scale + shift
        return jnp.where(z >= 0, z, NEG_SLOPE * z)

    # ---- stage 0: zero-padded flat copies built in VMEM (no HBM pad op) ----
    xpad_ref[...] = jnp.zeros_like(xpad_ref)
    y1pad_ref[...] = jnp.zeros_like(y1pad_ref)
    for b in range(batch):
        xpad_ref[b, :, pad:pad + n_pix] = x_ref[b]

    # ---- block 1: conv3x3 as one (C1, 9*Cin)@(9*Cin, B*n_pix) matmul -------
    build_stack(xpad_ref, stk1_ref, cin)
    y1 = jnp.dot(w1_ref[...], stk1_ref[...].astype(jnp.bfloat16),
                 preferred_element_type=jnp.float32)          # (C1, B*n_pix)
    z1 = bn_lrelu(y1, gb1_ref[...])
    for b in range(batch):   # store block-1 output already in padded layout
        y1pad_ref[b, :, pad:pad + n_pix] = z1[:, b * n_pix:(b + 1) * n_pix]

    # ---- block 2 ------------------------------------------------------------
    build_stack(y1pad_ref, stk2_ref, c1)
    y2 = jnp.dot(w2_ref[...], stk2_ref[...].astype(jnp.bfloat16),
                 preferred_element_type=jnp.float32)          # (C2, B*n_pix)
    z2 = bn_lrelu(y2, gb2_ref[...])
    for b in range(batch):
        o_ref[b] = z2[:, b * n_pix:(b + 1) * n_pix].astype(o_ref.dtype)


# ----------------------------------------------------------------------------
# Plain-JAX glue: weight repack only (no pads, no im2col, no transposes of x)
# ----------------------------------------------------------------------------
def _repack_weight(w_oihw):
    """(O, I, 3, 3) torch layout -> (O, 9*I), k = (dy*3+dx)*I + i, bf16."""
    O, I, KH, KW = w_oihw.shape
    return (jnp.transpose(w_oihw, (0, 2, 3, 1))
            .reshape(O, KH * KW * I).astype(jnp.bfloat16))


@jax.jit
def double_conv(x_nchw, params):
    B, cin, H, W = x_nchw.shape
    n_pix = H * W
    rpad = n_pix + 2 * (W + 1)

    w1 = _repack_weight(params["w1"])
    w2 = _repack_weight(params["w2"])
    gb1 = jnp.stack([params["g1"], params["beta1"]], axis=1).astype(jnp.float32)
    gb2 = jnp.stack([params["g2"], params["beta2"]], axis=1).astype(jnp.float32)
    cout1, cout2 = w1.shape[0], w2.shape[0]

    kernel = functools.partial(_double_conv_kernel,
                               batch=B, width=W, n_pix=n_pix)
    y = pl.pallas_call(
        kernel,
        out_shape=jax.ShapeDtypeStruct((B, cout2, n_pix), jnp.float32),
        grid=(1,),
        in_specs=[
            pl.BlockSpec((B, cin, n_pix), lambda i: (0, 0, 0)),
            pl.BlockSpec((cout1, 9 * cin), lambda i: (0, 0)),
            pl.BlockSpec((cout1, 2), lambda i: (0, 0)),
            pl.BlockSpec((cout2, 9 * cout1), lambda i: (0, 0)),
            pl.BlockSpec((cout2, 2), lambda i: (0, 0)),
        ],
        out_specs=pl.BlockSpec((B, cout2, n_pix), lambda i: (0, 0, 0)),
        scratch_shapes=[
            pltpu.VMEM((B, cin, rpad), jnp.float32),        # padded input
            pltpu.VMEM((B, cout1, rpad), jnp.float32),      # padded block-1 out
            pltpu.VMEM((9 * cin, B * n_pix), jnp.float32),  # im2col stack 1
            pltpu.VMEM((9 * cout1, B * n_pix), jnp.float32),# im2col stack 2
        ],
        compiler_params=pltpu.CompilerParams(
            dimension_semantics=("arbitrary",)),
    )(x_nchw.reshape(B, cin, n_pix), w1, gb1, w2, gb2)

    return y.reshape(B, cout2, H, W)                       # already NCHW order


# ----------------------------------------------------------------------------
# Pure-JAX reference (lax conv, same bf16 MXU-operand rounding) for checking
# ----------------------------------------------------------------------------
def _reference(x_nchw, params):
    dn = ("NCHW", "OIHW", "NCHW")

    def block(x, w, b, g, beta):
        y = lax.conv_general_dilated(
            x.astype(jnp.bfloat16), w.astype(jnp.bfloat16), (1, 1), "SAME",
            dimension_numbers=dn, preferred_element_type=jnp.float32)
        y = y + b[None, :, None, None]     # bias (cancels under training BN)
        mean = y.mean(axis=(0, 2, 3), keepdims=True)
        var = ((y - mean) ** 2).mean(axis=(0, 2, 3), keepdims=True)
        y = (y - mean) * lax.rsqrt(var + EPS)
        y = y * g[None, :, None, None] + beta[None, :, None, None]
        return jnp.where(y >= 0, y, NEG_SLOPE * y)

    y = block(x_nchw, params["w1"], params["b1"], params["g1"], params["beta1"])
    y = block(y, params["w2"], params["b2"], params["g2"], params["beta2"])
    return y


# ----------------------------------------------------------------------------
if __name__ == "__main__":
    inplanes, planes = 4, 8
    B, H, W = 2, 16, 16

    key = jax.random.PRNGKey(0)
    k_x, k_w1, k_b1, k_w2, k_b2 = jax.random.split(key, 5)

    x = jax.random.normal(k_x, (B, inplanes, H, W), jnp.float32)

    params = {
        "w1": jax.random.normal(k_w1, (planes, inplanes, 3, 3), jnp.float32) * 0.1,
        "b1": jax.random.normal(k_b1, (planes,), jnp.float32) * 0.1,
        "g1": 1.0 + 0.1 * jnp.arange(planes, dtype=jnp.float32),
        "beta1": 0.05 * jnp.arange(planes, dtype=jnp.float32) - 0.2,
        "w2": jax.random.normal(k_w2, (planes, planes, 3, 3), jnp.float32) * 0.1,
        "b2": jax.random.normal(k_b2, (planes,), jnp.float32) * 0.1,
        "g2": 1.0 - 0.05 * jnp.arange(planes, dtype=jnp.float32),
        "beta2": 0.03 * jnp.arange(planes, dtype=jnp.float32) + 0.1,
    }

    out = jax.block_until_ready(double_conv(x, params))
    ref = jax.block_until_ready(_reference(x, params))

    assert out.shape == (B, planes, H, W), out.shape
    err = float(jnp.max(jnp.abs(out - ref)))
    assert err < 1e-2, err

    print("KERNEL_OK")
</pallas_src>

<mosaic_0001>
module attributes {stable_mosaic.version = 11 : i64} {
  func.func @_double_conv_kernel(%arg0: i32, %arg1: memref<2x4x256xf32, #tpu.memory_space<vmem>>, %arg2: memref<8x36xbf16, #tpu.memory_space<vmem>>, %arg3: memref<8x2xf32, #tpu.memory_space<vmem>>, %arg4: memref<8x72xbf16, #tpu.memory_space<vmem>>, %arg5: memref<8x2xf32, #tpu.memory_space<vmem>>, %arg6: memref<2x8x256xf32, #tpu.memory_space<vmem>>, %arg7: memref<2x4x290xf32, #tpu.memory_space<vmem>>, %arg8: memref<2x8x290xf32, #tpu.memory_space<vmem>>, %arg9: memref<36x512xf32, #tpu.memory_space<vmem>>, %arg10: memref<72x512xf32, #tpu.memory_space<vmem>>) attributes {dimension_semantics = [#tpu.dimension_semantics<arbitrary>], iteration_bounds = array<i64: 1>, scalar_prefetch = 0 : i64, scratch_operands = 4 : i64, tpu.core_type = #tpu.core_type<tc>, window_params = [{pipeline_mode = #tpu.pipeline_mode<synchronous>, transform_indices = @transform_0, window_bounds = array<i64: 2, 4, 256>}, {pipeline_mode = #tpu.pipeline_mode<synchronous>, transform_indices = @transform_1, window_bounds = array<i64: 8, 36>}, {pipeline_mode = #tpu.pipeline_mode<synchronous>, transform_indices = @transform_2, window_bounds = array<i64: 8, 2>}, {pipeline_mode = #tpu.pipeline_mode<synchronous>, transform_indices = @transform_3, window_bounds = array<i64: 8, 72>}, {pipeline_mode = #tpu.pipeline_mode<synchronous>, transform_indices = @transform_4, window_bounds = array<i64: 8, 2>}, {pipeline_mode = #tpu.pipeline_mode<synchronous>, transform_indices = @transform_5, window_bounds = array<i64: 2, 8, 256>}]} {
    %0 = tpu.iota {dimensions = array<i32: 1>} : vector<1x256xi32>
    %c16_i32 = arith.constant 16 : i32
    %c0_i32 = arith.constant 0 : i32
    %1 = arith.cmpi eq, %c16_i32, %c0_i32 : i32
    %c1_i32 = arith.constant 1 : i32
    %2 = arith.select %1, %c1_i32, %c16_i32 : i32
    %3 = vector.broadcast %2 : i32 to vector<1x256xi32>
    %4 = arith.remsi %0, %3 : vector<1x256xi32>
    %c0_i32_0 = arith.constant 0 : i32
    %5 = vector.broadcast %c0_i32_0 : i32 to vector<1x256xi32>
    %6 = arith.cmpi ne, %4, %5 : vector<1x256xi32>
    %c0_i32_1 = arith.constant 0 : i32
    %7 = vector.broadcast %c0_i32_1 : i32 to vector<1x256xi32>
    %8 = arith.cmpi slt, %4, %7 : vector<1x256xi32>
    %c0_i32_2 = arith.constant 0 : i32
    %9 = arith.cmpi slt, %2, %c0_i32_2 : i32
    %10 = vector.broadcast %9 : i1 to vector<1x256xi1>
    %11 = vector.broadcast %10 : vector<1x256xi1> to vector<1x256xi1>
    %12 = arith.xori %8, %11 : vector<1x256xi1>
    %13 = arith.andi %12, %6 : vector<1x256xi1>
    %14 = vector.broadcast %2 : i32 to vector<1x256xi32>
    %15 = arith.addi %4, %14 : vector<1x256xi32>
    %16 = arith.select %13, %15, %4 : vector<1x256xi1>, vector<1x256xi32>
    %c0_i32_3 = arith.constant 0 : i32
    %17 = vector.broadcast %c0_i32_3 : i32 to vector<1x256xi32>
    %18 = arith.cmpi ne, %16, %17 : vector<1x256xi32>
    %c15_i32 = arith.constant 15 : i32
    %19 = vector.broadcast %c15_i32 : i32 to vector<1x256xi32>
    %20 = arith.cmpi ne, %16, %19 : vector<1x256xi32>
    %cst = arith.constant 0.000000e+00 : f32
    %21 = vector.broadcast %cst : f32 to vector<2x4x290xf32>
    %c0 = arith.constant 0 : index
    %c0_4 = arith.constant 0 : index
    %c0_5 = arith.constant 0 : index
    %22 = vector.load %arg7[%c0, %c0_4, %c0_5] : memref<2x4x290xf32, #tpu.memory_space<vmem>>, vector<2x4x290xf32>
    tpu.vector_store %arg7[%c0, %c0_4, %c0_5], %21 {strides = array<i32>} : memref<2x4x290xf32, #tpu.memory_space<vmem>>, vector<2x4x290xf32>,
    %cst_6 = arith.constant 0.000000e+00 : f32
    %23 = vector.broadcast %cst_6 : f32 to vector<2x8x290xf32>
    %c0_7 = arith.constant 0 : index
    %c0_8 = arith.constant 0 : index
    %c0_9 = arith.constant 0 : index
    %24 = vector.load %arg8[%c0_7, %c0_8, %c0_9] : memref<2x8x290xf32, #tpu.memory_space<vmem>>, vector<2x8x290xf32>
    tpu.vector_store %arg8[%c0_7, %c0_8, %c0_9], %23 {strides = array<i32>} : memref<2x8x290xf32, #tpu.memory_space<vmem>>, vector<2x8x290xf32>,
    %c0_10 = arith.constant 0 : index
    %c0_11 = arith.constant 0 : index
    %c0_12 = arith.constant 0 : index
    %25 = vector.load %arg1[%c0_10, %c0_11, %c0_12] : memref<2x4x256xf32, #tpu.memory_space<vmem>>, vector<1x4x256xf32>
    %26 = vector.shape_cast %25 : vector<1x4x256xf32> to vector<4x256xf32>
    %c0_13 = arith.constant 0 : index
    %c0_14 = arith.constant 0 : index
    %c17 = arith.constant 17 : index
    %27 = vector.load %arg7[%c0_13, %c0_14, %c17] : memref<2x4x290xf32, #tpu.memory_space<vmem>>, vector<1x4x256xf32>
    %28 = vector.shape_cast %27 : vector<1x4x256xf32> to vector<4x256xf32>
    %29 = vector.shape_cast %26 : vector<4x256xf32> to vector<1x4x256xf32>
    tpu.vector_store %arg7[%c0_13, %c0_14, %c17], %29 {strides = array<i32>} : memref<2x4x290xf32, #tpu.memory_space<vmem>>, vector<1x4x256xf32>,
    %c1 = arith.constant 1 : index
    %c0_15 = arith.constant 0 : index
    %c0_16 = arith.constant 0 : index
    %30 = vector.load %arg1[%c1, %c0_15, %c0_16] : memref<2x4x256xf32, #tpu.memory_space<vmem>>, vector<1x4x256xf32>
    %31 = vector.shape_cast %30 : vector<1x4x256xf32> to vector<4x256xf32>
    %c1_17 = arith.constant 1 : index
    %c0_18 = arith.constant 0 : index
    %c17_19 = arith.constant 17 : index
    %32 = vector.load %arg7[%c1_17, %c0_18, %c17_19] : memref<2x4x290xf32, #tpu.memory_space<vmem>>, vector<1x4x256xf32>
    %33 = vector.shape_cast %32 : vector<1x4x256xf32> to vector<4x256xf32>
    %34 = vector.shape_cast %31 : vector<4x256xf32> to vector<1x4x256xf32>
    tpu.vector_store %arg7[%c1_17, %c0_18, %c17_19], %34 {strides = array<i32>} : memref<2x4x290xf32, #tpu.memory_space<vmem>>, vector<1x4x256xf32>,
    %c0_20 = arith.constant 0 : index
    %c0_21 = arith.constant 0 : index
    %c0_22 = arith.constant 0 : index
    %35 = vector.load %arg7[%c0_20, %c0_21, %c0_22] : memref<2x4x290xf32, #tpu.memory_space<vmem>>, vector<1x4x256xf32>
    %36 = vector.shape_cast %35 : vector<1x4x256xf32> to vector<4x256xf32>
    %cst_23 = arith.constant 0.000000e+00 : f32
    %37 = vector.shape_cast %18 : vector<1x256xi1> to vector<1x256xi1>
    %38 = vector.broadcast %37 : vector<1x256xi1> to vector<4x256xi1>
    %39 = vector.broadcast %cst_23 : f32 to vector<4x256xf32>
    %40 = arith.select %38, %36, %39 : vector<4x256xi1>, vector<4x256xf32>
    %c0_24 = arith.constant 0 : index
    %c0_25 = arith.constant 0 : index
    %41 = vector.load %arg9[%c0_24, %c0_25] : memref<36x512xf32, #tpu.memory_space<vmem>>, vector<4x256xf32>
    tpu.vector_store %arg9[%c0_24, %c0_25], %40 {strides = array<i32>} : memref<36x512xf32, #tpu.memory_space<vmem>>, vector<4x256xf32>,
    %c0_26 = arith.constant 0 : index
    %c0_27 = arith.constant 0 : index
    %c1_28 = arith.constant 1 : index
    %42 = vector.load %arg7[%c0_26, %c0_27, %c1_28] : memref<2x4x290xf32, #tpu.memory_space<vmem>>, vector<1x4x256xf32>
    %43 = vector.shape_cast %42 : vector<1x4x256xf32> to vector<4x256xf32>
    %c4 = arith.constant 4 : index
    %c0_29 = arith.constant 0 : index
    %44 = vector.load %arg9[%c4, %c0_29] : memref<36x512xf32, #tpu.memory_space<vmem>>, vector<4x256xf32>
    tpu.vector_store %arg9[%c4, %c0_29], %43 {strides = array<i32>} : memref<36x512xf32, #tpu.memory_space<vmem>>, vector<4x256xf32>,
    %c0_30 = arith.constant 0 : index
    %c0_31 = arith.constant 0 : index
    %c2 = arith.constant 2 : index
    %45 = vector.load %arg7[%c0_30, %c0_31, %c2] : memref<2x4x290xf32, #tpu.memory_space<vmem>>, vector<1x4x256xf32>
    %46 = vector.shape_cast %45 : vector<1x4x256xf32> to vector<4x256xf32>
    %cst_32 = arith.constant 0.000000e+00 : f32
    %47 = vector.shape_cast %20 : vector<1x256xi1> to vector<1x256xi1>
    %48 = vector.broadcast %47 : vector<1x256xi1> to vector<4x256xi1>
    %49 = vector.broadcast %cst_32 : f32 to vector<4x256xf32>
    %50 = arith.select %48, %46, %49 : vector<4x256xi1>, vector<4x256xf32>
    %c8 = arith.constant 8 : index
    %c0_33 = arith.constant 0 : index
    %51 = vector.load %arg9[%c8, %c0_33] : memref<36x512xf32, #tpu.memory_space<vmem>>, vector<4x256xf32>
    tpu.vector_store %arg9[%c8, %c0_33], %50 {strides = array<i32>} : memref<36x512xf32, #tpu.memory_space<vmem>>, vector<4x256xf32>,
    %c0_34 = arith.constant 0 : index
    %c0_35 = arith.constant 0 : index
    %c16 = arith.constant 16 : index
    %52 = vector.load %arg7[%c0_34, %c0_35, %c16] : memref<2x4x290xf32, #tpu.memory_space<vmem>>, vector<1x4x256xf32>
    %53 = vector.shape_cast %52 : vector<1x4x256xf32> to vector<4x256xf32>
    %cst_36 = arith.constant 0.000000e+00 : f32
    %54 = vector.shape_cast %18 : vector<1x256xi1> to vector<1x256xi1>
    %55 = vector.broadcast %54 : vector<1x256xi1> to vector<4x256xi1>
    %56 = vector.broadcast %cst_36 : f32 to vector<4x256xf32>
    %57 = arith.select %55, %53, %56 : vector<4x256xi1>, vector<4x256xf32>
    %c12 = arith.constant 12 : index
    %c0_37 = arith.constant 0 : index
    %58 = vector.load %arg9[%c12, %c0_37] : memref<36x512xf32, #tpu.memory_space<vmem>>, vector<4x256xf32>
    tpu.vector_store %arg9[%c12, %c0_37], %57 {strides = array<i32>} : memref<36x512xf32, #tpu.memory_space<vmem>>, vector<4x256xf32>,
    %c0_38 = arith.constant 0 : index
    %c0_39 = arith.constant 0 : index
    %c17_40 = arith.constant 17 : index
    %59 = vector.load %arg7[%c0_38, %c0_39, %c17_40] : memref<2x4x290xf32, #tpu.memory_space<vmem>>, vector<1x4x256xf32>
    %60 = vector.shape_cast %59 : vector<1x4x256xf32> to vector<4x256xf32>
    %c16_41 = arith.constant 16 : index
    %c0_42 = arith.constant 0 : index
    %61 = vector.load %arg9[%c16_41, %c0_42] : memref<36x512xf32, #tpu.memory_space<vmem>>, vector<4x256xf32>
    tpu.vector_store %arg9[%c16_41, %c0_42], %60 {strides = array<i32>} : memref<36x512xf32, #tpu.memory_space<vmem>>, vector<4x256xf32>,
    %c0_43 = arith.constant 0 : index
    %c0_44 = arith.constant 0 : index
    %c18 = arith.constant 18 : index
    %62 = vector.load %arg7[%c0_43, %c0_44, %c18] : memref<2x4x290xf32, #tpu.memory_space<vmem>>, vector<1x4x256xf32>
    %63 = vector.shape_cast %62 : vector<1x4x256xf32> to vector<4x256xf32>
    %cst_45 = arith.constant 0.000000e+00 : f32
    %64 = vector.shape_cast %20 : vector<1x256xi1> to vector<1x256xi1>
    %65 = vector.broadcast %64 : vector<1x256xi1> to vector<4x256xi1>
    %66 = vector.broadcast %cst_45 : f32 to vector<4x256xf32>
    %67 = arith.select %65, %63, %66 : vector<4x256xi1>, vector<4x256xf32>
    %c20 = arith.constant 20 : index
    %c0_46 = arith.constant 0 : index
    %68 = vector.load %arg9[%c20, %c0_46] : memref<36x512xf32, #tpu.memory_space<vmem>>, vector<4x256xf32>
    tpu.vector_store %arg9[%c20, %c0_46], %67 {strides = array<i32>} : memref<36x512xf32, #tpu.memory_space<vmem>>, vector<4x256xf32>,
    %c0_47 = arith.constant 0 : index
    %c0_48 = arith.constant 0 : index
    %c32 = arith.constant 32 : index
    %69 = vector.load %arg7[%c0_47, %c0_48, %c32] : memref<2x4x290xf32, #tpu.memory_space<vmem>>, vector<1x4x256xf32>
    %70 = vector.shape_cast %69 : vector<1x4x256xf32> to vector<4x256xf32>
    %cst_49 = arith.constant 0.000000e+00 : f32
    %71 = vector.shape_cast %18 : vector<1x256xi1> to vector<1x256xi1>
    %72 = vector.broadcast %71 : vector<1x256xi1> to vector<4x256xi1>
    %73 = vector.broadcast %cst_49 : f32 to vector<4x256xf32>
    %74 = arith.select %72, %70, %73 : vector<4x256xi1>, vector<4x256xf32>
    %c24 = arith.constant 24 : index
    %c0_50 = arith.constant 0 : index
    %75 = vector.load %arg9[%c24, %c0_50] : memref<36x512xf32, #tpu.memory_space<vmem>>, vector<4x256xf32>
    tpu.vector_store %arg9[%c24, %c0_50], %74 {strides = array<i32>} : memref<36x512xf32, #tpu.memory_space<vmem>>, vector<4x256xf32>,
    %c0_51 = arith.constant 0 : index
    %c0_52 = arith.constant 0 : index
    %c33 = arith.constant 33 : index
    %76 = vector.load %arg7[%c0_51, %c0_52, %c33] : memref<2x4x290xf32, #tpu.memory_space<vmem>>, vector<1x4x256xf32>
    %77 = vector.shape_cast %76 : vector<1x4x256xf32> to vector<4x256xf32>
    %c28 = arith.constant 28 : index
    %c0_53 = arith.constant 0 : index
    %78 = vector.load %arg9[%c28, %c0_53] : memref<36x512xf32, #tpu.memory_space<vmem>>, vector<4x256xf32>
    tpu.vector_store %arg9[%c28, %c0_53], %77 {strides = array<i32>} : memref<36x512xf32, #tpu.memory_space<vmem>>, vector<4x256xf32>,
    %c0_54 = arith.constant 0 : index
    %c0_55 = arith.constant 0 : index
    %c34 = arith.constant 34 : index
    %79 = vector.load %arg7[%c0_54, %c0_55, %c34] : memref<2x4x290xf32, #tpu.memory_space<vmem>>, vector<1x4x256xf32>
    %80 = vector.shape_cast %79 : vector<1x4x256xf32> to vector<4x256xf32>
    %cst_56 = arith.constant 0.000000e+00 : f32
    %81 = vector.shape_cast %20 : vector<1x256xi1> to vector<1x256xi1>
    %82 = vector.broadcast %81 : vector<1x256xi1> to vector<4x256xi1>
    %83 = vector.broadcast %cst_56 : f32 to vector<4x256xf32>
    %84 = arith.select %82, %80, %83 : vector<4x256xi1>, vector<4x256xf32>
    %c32_57 = arith.constant 32 : index
    %c0_58 = arith.constant 0 : index
    %85 = vector.load %arg9[%c32_57, %c0_58] : memref<36x512xf32, #tpu.memory_space<vmem>>, vector<4x256xf32>
    tpu.vector_store %arg9[%c32_57, %c0_58], %84 {strides = array<i32>} : memref<36x512xf32, #tpu.memory_space<vmem>>, vector<4x256xf32>,
    %c1_59 = arith.constant 1 : index
    %c0_60 = arith.constant 0 : index
    %c0_61 = arith.constant 0 : index
    %86 = vector.load %arg7[%c1_59, %c0_60, %c0_61] : memref<2x4x290xf32, #tpu.memory_space<vmem>>, vector<1x4x256xf32>
    %87 = vector.shape_cast %86 : vector<1x4x256xf32> to vector<4x256xf32>
    %cst_62 = arith.constant 0.000000e+00 : f32
    %88 = vector.shape_cast %18 : vector<1x256xi1> to vector<1x256xi1>
    %89 = vector.broadcast %88 : vector<1x256xi1> to vector<4x256xi1>
    %90 = vector.broadcast %cst_62 : f32 to vector<4x256xf32>
    %91 = arith.select %89, %87, %90 : vector<4x256xi1>, vector<4x256xf32>
    %c0_63 = arith.constant 0 : index
    %c256 = arith.constant 256 : index
    %92 = vector.load %arg9[%c0_63, %c256] : memref<36x512xf32, #tpu.memory_space<vmem>>, vector<4x256xf32>
    tpu.vector_store %arg9[%c0_63, %c256], %91 {strides = array<i32>} : memref<36x512xf32, #tpu.memory_space<vmem>>, vector<4x256xf32>,
    %c1_64 = arith.constant 1 : index
    %c0_65 = arith.constant 0 : index
    %c1_66 = arith.constant 1 : index
    %93 = vector.load %arg7[%c1_64, %c0_65, %c1_66] : memref<2x4x290xf32, #tpu.memory_space<vmem>>, vector<1x4x256xf32>
    %94 = vector.shape_cast %93 : vector<1x4x256xf32> to vector<4x256xf32>
    %c4_67 = arith.constant 4 : index
    %c256_68 = arith.constant 256 : index
    %95 = vector.load %arg9[%c4_67, %c256_68] : memref<36x512xf32, #tpu.memory_space<vmem>>, vector<4x256xf32>
    tpu.vector_store %arg9[%c4_67, %c256_68], %94 {strides = array<i32>} : memref<36x512xf32, #tpu.memory_space<vmem>>, vector<4x256xf32>,
    %c1_69 = arith.constant 1 : index
    %c0_70 = arith.constant 0 : index
    %c2_71 = arith.constant 2 : index
    %96 = vector.load %arg7[%c1_69, %c0_70, %c2_71] : memref<2x4x290xf32, #tpu.memory_space<vmem>>, vector<1x4x256xf32>
    %97 = vector.shape_cast %96 : vector<1x4x256xf32> to vector<4x256xf32>
    %cst_72 = arith.constant 0.000000e+00 : f32
    %98 = vector.shape_cast %20 : vector<1x256xi1> to vector<1x256xi1>
    %99 = vector.broadcast %98 : vector<1x256xi1> to vector<4x256xi1>
    %100 = vector.broadcast %cst_72 : f32 to vector<4x256xf32>
    %101 = arith.select %99, %97, %100 : vector<4x256xi1>, vector<4x256xf32>
    %c8_73 = arith.constant 8 : index
    %c256_74 = arith.constant 256 : index
    %102 = vector.load %arg9[%c8_73, %c256_74] : memref<36x512xf32, #tpu.memory_space<vmem>>, vector<4x256xf32>
    tpu.vector_store %arg9[%c8_73, %c256_74], %101 {strides = array<i32>} : memref<36x512xf32, #tpu.memory_space<vmem>>, vector<4x256xf32>,
    %c1_75 = arith.constant 1 : index
    %c0_76 = arith.constant 0 : index
    %c16_77 = arith.constant 16 : index
    %103 = vector.load %arg7[%c1_75, %c0_76, %c16_77] : memref<2x4x290xf32, #tpu.memory_space<vmem>>, vector<1x4x256xf32>
    %104 = vector.shape_cast %103 : vector<1x4x256xf32> to vector<4x256xf32>
    %cst_78 = arith.constant 0.000000e+00 : f32
    %105 = vector.shape_cast %18 : vector<1x256xi1> to vector<1x256xi1>
    %106 = vector.broadcast %105 : vector<1x256xi1> to vector<4x256xi1>
    %107 = vector.broadcast %cst_78 : f32 to vector<4x256xf32>
    %108 = arith.select %106, %104, %107 : vector<4x256xi1>, vector<4x256xf32>
    %c12_79 = arith.constant 12 : index
    %c256_80 = arith.constant 256 : index
    %109 = vector.load %arg9[%c12_79, %c256_80] : memref<36x512xf32, #tpu.memory_space<vmem>>, vector<4x256xf32>
    tpu.vector_store %arg9[%c12_79, %c256_80], %108 {strides = array<i32>} : memref<36x512xf32, #tpu.memory_space<vmem>>, vector<4x256xf32>,
    %c1_81 = arith.constant 1 : index
    %c0_82 = arith.constant 0 : index
    %c17_83 = arith.constant 17 : index
    %110 = vector.load %arg7[%c1_81, %c0_82, %c17_83] : memref<2x4x290xf32, #tpu.memory_space<vmem>>, vector<1x4x256xf32>
    %111 = vector.shape_cast %110 : vector<1x4x256xf32> to vector<4x256xf32>
    %c16_84 = arith.constant 16 : index
    %c256_85 = arith.constant 256 : index
    %112 = vector.load %arg9[%c16_84, %c256_85] : memref<36x512xf32, #tpu.memory_space<vmem>>, vector<4x256xf32>
    tpu.vector_store %arg9[%c16_84, %c256_85], %111 {strides = array<i32>} : memref<36x512xf32, #tpu.memory_space<vmem>>, vector<4x256xf32>,
    %c1_86 = arith.constant 1 : index
    %c0_87 = arith.constant 0 : index
    %c18_88 = arith.constant 18 : index
    %113 = vector.load %arg7[%c1_86, %c0_87, %c18_88] : memref<2x4x290xf32, #tpu.memory_space<vmem>>, vector<1x4x256xf32>
    %114 = vector.shape_cast %113 : vector<1x4x256xf32> to vector<4x256xf32>
    %cst_89 = arith.constant 0.000000e+00 : f32
    %115 = vector.shape_cast %20 : vector<1x256xi1> to vector<1x256xi1>
    %116 = vector.broadcast %115 : vector<1x256xi1> to vector<4x256xi1>
    %117 = vector.broadcast %cst_89 : f32 to vector<4x256xf32>
    %118 = arith.select %116, %114, %117 : vector<4x256xi1>, vector<4x256xf32>
    %c20_90 = arith.constant 20 : index
    %c256_91 = arith.constant 256 : index
    %119 = vector.load %arg9[%c20_90, %c256_91] : memref<36x512xf32, #tpu.memory_space<vmem>>, vector<4x256xf32>
    tpu.vector_store %arg9[%c20_90, %c256_91], %118 {strides = array<i32>} : memref<36x512xf32, #tpu.memory_space<vmem>>, vector<4x256xf32>,
    %c1_92 = arith.constant 1 : index
    %c0_93 = arith.constant 0 : index
    %c32_94 = arith.constant 32 : index
    %120 = vector.load %arg7[%c1_92, %c0_93, %c32_94] : memref<2x4x290xf32, #tpu.memory_space<vmem>>, vector<1x4x256xf32>
    %121 = vector.shape_cast %120 : vector<1x4x256xf32> to vector<4x256xf32>
    %cst_95 = arith.constant 0.000000e+00 : f32
    %122 = vector.shape_cast %18 : vector<1x256xi1> to vector<1x256xi1>
    %123 = vector.broadcast %122 : vector<1x256xi1> to vector<4x256xi1>
    %124 = vector.broadcast %cst_95 : f32 to vector<4x256xf32>
    %125 = arith.select %123, %121, %124 : vector<4x256xi1>, vector<4x256xf32>
    %c24_96 = arith.constant 24 : index
    %c256_97 = arith.constant 256 : index
    %126 = vector.load %arg9[%c24_96, %c256_97] : memref<36x512xf32, #tpu.memory_space<vmem>>, vector<4x256xf32>
    tpu.vector_store %arg9[%c24_96, %c256_97], %125 {strides = array<i32>} : memref<36x512xf32, #tpu.memory_space<vmem>>, vector<4x256xf32>,
    %c1_98 = arith.constant 1 : index
    %c0_99 = arith.constant 0 : index
    %c33_100 = arith.constant 33 : index
    %127 = vector.load %arg7[%c1_98, %c0_99, %c33_100] : memref<2x4x290xf32, #tpu.memory_space<vmem>>, vector<1x4x256xf32>
    %128 = vector.shape_cast %127 : vector<1x4x256xf32> to vector<4x256xf32>
    %c28_101 = arith.constant 28 : index
    %c256_102 = arith.constant 256 : index
    %129 = vector.load %arg9[%c28_101, %c256_102] : memref<36x512xf32, #tpu.memory_space<vmem>>, vector<4x256xf32>
    tpu.vector_store %arg9[%c28_101, %c256_102], %128 {strides = array<i32>} : memref<36x512xf32, #tpu.memory_space<vmem>>, vector<4x256xf32>,
    %c1_103 = arith.constant 1 : index
    %c0_104 = arith.constant 0 : index
    %c34_105 = arith.constant 34 : index
    %130 = vector.load %arg7[%c1_103, %c0_104, %c34_105] : memref<2x4x290xf32, #tpu.memory_space<vmem>>, vector<1x4x256xf32>
    %131 = vector.shape_cast %130 : vector<1x4x256xf32> to vector<4x256xf32>
    %cst_106 = arith.constant 0.000000e+00 : f32
    %132 = vector.shape_cast %20 : vector<1x256xi1> to vector<1x256xi1>
    %133 = vector.broadcast %132 : vector<1x256xi1> to vector<4x256xi1>
    %134 = vector.broadcast %cst_106 : f32 to vector<4x256xf32>
    %135 = arith.select %133, %131, %134 : vector<4x256xi1>, vector<4x256xf32>
    %c32_107 = arith.constant 32 : index
    %c256_108 = arith.constant 256 : index
    %136 = vector.load %arg9[%c32_107, %c256_108] : memref<36x512xf32, #tpu.memory_space<vmem>>, vector<4x256xf32>
    tpu.vector_store %arg9[%c32_107, %c256_108], %135 {strides = array<i32>} : memref<36x512xf32, #tpu.memory_space<vmem>>, vector<4x256xf32>,
    %c0_109 = arith.constant 0 : index
    %c0_110 = arith.constant 0 : index
    %137 = vector.load %arg2[%c0_109, %c0_110] : memref<8x36xbf16, #tpu.memory_space<vmem>>, vector<8x36xbf16>
    %c0_111 = arith.constant 0 : index
    %c0_112 = arith.constant 0 : index
    %138 = vector.load %arg9[%c0_111, %c0_112] : memref<36x512xf32, #tpu.memory_space<vmem>>, vector<36x512xf32>
    %139 = arith.truncf %138 : vector<36x512xf32> to vector<36x512xbf16>
    %cst_113 = arith.constant dense<0.000000e+00> : vector<8x512xf32>
    %140 = tpu.matmul %137, %139, %cst_113 {dimension_numbers = #tpu.dot_dimension_numbers<[1], [0], [0], [1], [0, 0, 1, 1], [], []>} : vector<8x36xbf16>, vector<36x512xbf16>, vector<8x512xf32> -> vector<8x512xf32>
    %c0_114 = arith.constant 0 : index
    %c0_115 = arith.constant 0 : index
    %141 = vector.load %arg3[%c0_114, %c0_115] : memref<8x2xf32, #tpu.memory_space<vmem>>, vector<8x2xf32>
    %cst_116 = arith.constant dense<0.000000e+00> : vector<8xf32>
    %142 = vector.multi_reduction <add>, %140, %cst_116 [1] : vector<8x512xf32> to vector<8xf32>
    %143 = vector.shape_cast %142 : vector<8xf32> to vector<8x1xf32>
    %cst_117 = arith.constant 5.120000e+02 : f32
    %144 = vector.broadcast %cst_117 : f32 to vector<8x1xf32>
    %145 = arith.divf %143, %144 : vector<8x1xf32>
    %146 = vector.broadcast %145 : vector<8x1xf32> to vector<8x512xf32>
    %147 = arith.subf %140, %146 : vector<8x512xf32>
    %148 = arith.mulf %147, %147 : vector<8x512xf32>
    %cst_118 = arith.constant dense<0.000000e+00> : vector<8xf32>
    %149 = vector.multi_reduction <add>, %148, %cst_118 [1] : vector<8x512xf32> to vector<8xf32>
    %150 = vector.shape_cast %149 : vector<8xf32> to vector<8x1xf32>
    %cst_119 = arith.constant 5.120000e+02 : f32
    %151 = vector.broadcast %cst_119 : f32 to vector<8x1xf32>
    %152 = arith.divf %150, %151 : vector<8x1xf32>
    %153 = vector.extract_strided_slice %141 {offsets = [0, 0], sizes = [8, 1], strides = [1, 1]} : vector<8x2xf32> to vector<8x1xf32>
    %cst_120 = arith.constant 9.99999974E-6 : f32
    %154 = vector.broadcast %cst_120 : f32 to vector<8x1xf32>
    %155 = arith.addf %152, %154 : vector<8x1xf32>
    %156 = math.rsqrt %155 : vector<8x1xf32>
    %157 = arith.mulf %153, %156 : vector<8x1xf32>
    %158 = vector.extract_strided_slice %141 {offsets = [0, 1], sizes = [8, 1], strides = [1, 1]} : vector<8x2xf32> to vector<8x1xf32>
    %159 = arith.mulf %145, %157 : vector<8x1xf32>
    %160 = arith.subf %158, %159 : vector<8x1xf32>
    %161 = vector.broadcast %157 : vector<8x1xf32> to vector<8x512xf32>
    %162 = arith.mulf %140, %161 : vector<8x512xf32>
    %163 = vector.broadcast %160 : vector<8x1xf32> to vector<8x512xf32>
    %164 = arith.addf %162, %163 : vector<8x512xf32>
    %cst_121 = arith.constant 0.000000e+00 : f32
    %165 = vector.broadcast %cst_121 : f32 to vector<8x512xf32>
    %166 = arith.cmpf oge, %164, %165 : vector<8x512xf32>
    %cst_122 = arith.constant 0.00999999977 : f32
    %167 = vector.broadcast %cst_122 : f32 to vector<8x512xf32>
    %168 = arith.mulf %167, %164 : vector<8x512xf32>
    %169 = arith.select %166, %164, %168 : vector<8x512xi1>, vector<8x512xf32>
    %170 = vector.extract_strided_slice %169 {offsets = [0, 0], sizes = [8, 256], strides = [1, 1]} : vector<8x512xf32> to vector<8x256xf32>
    %c0_123 = arith.constant 0 : index
    %c0_124 = arith.constant 0 : index
    %c17_125 = arith.constant 17 : index
    %171 = vector.load %arg8[%c0_123, %c0_124, %c17_125] : memref<2x8x290xf32, #tpu.memory_space<vmem>>, vector<1x8x256xf32>
    %172 = vector.shape_cast %171 : vector<1x8x256xf32> to vector<8x256xf32>
    %173 = vector.shape_cast %170 : vector<8x256xf32> to vector<1x8x256xf32>
    tpu.vector_store %arg8[%c0_123, %c0_124, %c17_125], %173 {strides = array<i32>} : memref<2x8x290xf32, #tpu.memory_space<vmem>>, vector<1x8x256xf32>,
    %174 = vector.extract_strided_slice %169 {offsets = [0, 256], sizes = [8, 256], strides = [1, 1]} : vector<8x512xf32> to vector<8x256xf32>
    %c1_126 = arith.constant 1 : index
    %c0_127 = arith.constant 0 : index
    %c17_128 = arith.constant 17 : index
    %175 = vector.load %arg8[%c1_126, %c0_127, %c17_128] : memref<2x8x290xf32, #tpu.memory_space<vmem>>, vector<1x8x256xf32>
    %176 = vector.shape_cast %175 : vector<1x8x256xf32> to vector<8x256xf32>
    %177 = vector.shape_cast %174 : vector<8x256xf32> to vector<1x8x256xf32>
    tpu.vector_store %arg8[%c1_126, %c0_127, %c17_128], %177 {strides = array<i32>} : memref<2x8x290xf32, #tpu.memory_space<vmem>>, vector<1x8x256xf32>,
    %c0_129 = arith.constant 0 : index
    %c0_130 = arith.constant 0 : index
    %c0_131 = arith.constant 0 : index
    %178 = vector.load %arg8[%c0_129, %c0_130, %c0_131] : memref<2x8x290xf32, #tpu.memory_space<vmem>>, vector<1x8x256xf32>
    %179 = vector.shape_cast %178 : vector<1x8x256xf32> to vector<8x256xf32>
    %cst_132 = arith.constant 0.000000e+00 : f32
    %180 = vector.shape_cast %18 : vector<1x256xi1> to vector<1x256xi1>
    %181 = vector.broadcast %180 : vector<1x256xi1> to vector<8x256xi1>
    %182 = vector.broadcast %cst_132 : f32 to vector<8x256xf32>
    %183 = arith.select %181, %179, %182 : vector<8x256xi1>, vector<8x256xf32>
    %c0_133 = arith.constant 0 : index
    %c0_134 = arith.constant 0 : index
    %184 = vector.load %arg10[%c0_133, %c0_134] : memref<72x512xf32, #tpu.memory_space<vmem>>, vector<8x256xf32>
    tpu.vector_store %arg10[%c0_133, %c0_134], %183 {strides = array<i32>} : memref<72x512xf32, #tpu.memory_space<vmem>>, vector<8x256xf32>,
    %c0_135 = arith.constant 0 : index
    %c0_136 = arith.constant 0 : index
    %c1_137 = arith.constant 1 : index
    %185 = vector.load %arg8[%c0_135, %c0_136, %c1_137] : memref<2x8x290xf32, #tpu.memory_space<vmem>>, vector<1x8x256xf32>
    %186 = vector.shape_cast %185 : vector<1x8x256xf32> to vector<8x256xf32>
    %c8_138 = arith.constant 8 : index
    %c0_139 = arith.constant 0 : index
    %187 = vector.load %arg10[%c8_138, %c0_139] : memref<72x512xf32, #tpu.memory_space<vmem>>, vector<8x256xf32>
    tpu.vector_store %arg10[%c8_138, %c0_139], %186 {strides = array<i32>} : memref<72x512xf32, #tpu.memory_space<vmem>>, vector<8x256xf32>,
    %c0_140 = arith.constant 0 : index
    %c0_141 = arith.constant 0 : index
    %c2_142 = arith.constant 2 : index
    %188 = vector.load %arg8[%c0_140, %c0_141, %c2_142] : memref<2x8x290xf32, #tpu.memory_space<vmem>>, vector<1x8x256xf32>
    %189 = vector.shape_cast %188 : vector<1x8x256xf32> to vector<8x256xf32>
    %cst_143 = arith.constant 0.000000e+00 : f32
    %190 = vector.shape_cast %20 : vector<1x256xi1> to vector<1x256xi1>
    %191 = vector.broadcast %190 : vector<1x256xi1> to vector<8x256xi1>
    %192 = vector.broadcast %cst_143 : f32 to vector<8x256xf32>
    %193 = arith.select %191, %189, %192 : vector<8x256xi1>, vector<8x256xf32>
    %c16_144 = arith.constant 16 : index
    %c0_145 = arith.constant 0 : index
    %194 = vector.load %arg10[%c16_144, %c0_145] : memref<72x512xf32, #tpu.memory_space<vmem>>, vector<8x256xf32>
    tpu.vector_store %arg10[%c16_144, %c0_145], %193 {strides = array<i32>} : memref<72x512xf32, #tpu.memory_space<vmem>>, vector<8x256xf32>,
    %c0_146 = arith.constant 0 : index
    %c0_147 = arith.constant 0 : index
    %c16_148 = arith.constant 16 : index
    %195 = vector.load %arg8[%c0_146, %c0_147, %c16_148] : memref<2x8x290xf32, #tpu.memory_space<vmem>>, vector<1x8x256xf32>
    %196 = vector.shape_cast %195 : vector<1x8x256xf32> to vector<8x256xf32>
    %cst_149 = arith.constant 0.000000e+00 : f32
    %197 = vector.shape_cast %18 : vector<1x256xi1> to vector<1x256xi1>
    %198 = vector.broadcast %197 : vector<1x256xi1> to vector<8x256xi1>
    %199 = vector.broadcast %cst_149 : f32 to vector<8x256xf32>
    %200 = arith.select %198, %196, %199 : vector<8x256xi1>, vector<8x256xf32>
    %c24_150 = arith.constant 24 : index
    %c0_151 = arith.constant 0 : index
    %201 = vector.load %arg10[%c24_150, %c0_151] : memref<72x512xf32, #tpu.memory_space<vmem>>, vector<8x256xf32>
    tpu.vector_store %arg10[%c24_150, %c0_151], %200 {strides = array<i32>} : memref<72x512xf32, #tpu.memory_space<vmem>>, vector<8x256xf32>,
    %c0_152 = arith.constant 0 : index
    %c0_153 = arith.constant 0 : index
    %c17_154 = arith.constant 17 : index
    %202 = vector.load %arg8[%c0_152, %c0_153, %c17_154] : memref<2x8x290xf32, #tpu.memory_space<vmem>>, vector<1x8x256xf32>
    %203 = vector.shape_cast %202 : vector<1x8x256xf32> to vector<8x256xf32>
    %c32_155 = arith.constant 32 : index
    %c0_156 = arith.constant 0 : index
    %204 = vector.load %arg10[%c32_155, %c0_156] : memref<72x512xf32, #tpu.memory_space<vmem>>, vector<8x256xf32>
    tpu.vector_store %arg10[%c32_155, %c0_156], %203 {strides = array<i32>} : memref<72x512xf32, #tpu.memory_space<vmem>>, vector<8x256xf32>,
    %c0_157 = arith.constant 0 : index
    %c0_158 = arith.constant 0 : index
    %c18_159 = arith.constant 18 : index
    %205 = vector.load %arg8[%c0_157, %c0_158, %c18_159] : memref<2x8x290xf32, #tpu.memory_space<vmem>>, vector<1x8x256xf32>
    %206 = vector.shape_cast %205 : vector<1x8x256xf32> to vector<8x256xf32>
    %cst_160 = arith.constant 0.000000e+00 : f32
    %207 = vector.shape_cast %20 : vector<1x256xi1> to vector<1x256xi1>
    %208 = vector.broadcast %207 : vector<1x256xi1> to vector<8x256xi1>
    %209 = vector.broadcast %cst_160 : f32 to vector<8x256xf32>
    %210 = arith.select %208, %206, %209 : vector<8x256xi1>, vector<8x256xf32>
    %c40 = arith.constant 40 : index
    %c0_161 = arith.constant 0 : index
    %211 = vector.load %arg10[%c40, %c0_161] : memref<72x512xf32, #tpu.memory_space<vmem>>, vector<8x256xf32>
    tpu.vector_store %arg10[%c40, %c0_161], %210 {strides = array<i32>} : memref<72x512xf32, #tpu.memory_space<vmem>>, vector<8x256xf32>,
    %c0_162 = arith.constant 0 : index
    %c0_163 = arith.constant 0 : index
    %c32_164 = arith.constant 32 : index
    %212 = vector.load %arg8[%c0_162, %c0_163, %c32_164] : memref<2x8x290xf32, #tpu.memory_space<vmem>>, vector<1x8x256xf32>
    %213 = vector.shape_cast %212 : vector<1x8x256xf32> to vector<8x256xf32>
    %cst_165 = arith.constant 0.000000e+00 : f32
    %214 = vector.shape_cast %18 : vector<1x256xi1> to vector<1x256xi1>
    %215 = vector.broadcast %214 : vector<1x256xi1> to vector<8x256xi1>
    %216 = vector.broadcast %cst_165 : f32 to vector<8x256xf32>
    %217 = arith.select %215, %213, %216 : vector<8x256xi1>, vector<8x256xf32>
    %c48 = arith.constant 48 : index
    %c0_166 = arith.constant 0 : index
    %218 = vector.load %arg10[%c48, %c0_166] : memref<72x512xf32, #tpu.memory_space<vmem>>, vector<8x256xf32>
    tpu.vector_store %arg10[%c48, %c0_166], %217 {strides = array<i32>} : memref<72x512xf32, #tpu.memory_space<vmem>>, vector<8x256xf32>,
    %c0_167 = arith.constant 0 : index
    %c0_168 = arith.constant 0 : index
    %c33_169 = arith.constant 33 : index
    %219 = vector.load %arg8[%c0_167, %c0_168, %c33_169] : memref<2x8x290xf32, #tpu.memory_space<vmem>>, vector<1x8x256xf32>
    %220 = vector.shape_cast %219 : vector<1x8x256xf32> to vector<8x256xf32>
    %c56 = arith.constant 56 : index
    %c0_170 = arith.constant 0 : index
    %221 = vector.load %arg10[%c56, %c0_170] : memref<72x512xf32, #tpu.memory_space<vmem>>, vector<8x256xf32>
    tpu.vector_store %arg10[%c56, %c0_170], %220 {strides = array<i32>} : memref<72x512xf32, #tpu.memory_space<vmem>>, vector<8x256xf32>,
    %c0_171 = arith.constant 0 : index
    %c0_172 = arith.constant 0 : index
    %c34_173 = arith.constant 34 : index
    %222 = vector.load %arg8[%c0_171, %c0_172, %c34_173] : memref<2x8x290xf32, #tpu.memory_space<vmem>>, vector<1x8x256xf32>
    %223 = vector.shape_cast %222 : vector<1x8x256xf32> to vector<8x256xf32>
    %cst_174 = arith.constant 0.000000e+00 : f32
    %224 = vector.shape_cast %20 : vector<1x256xi1> to vector<1x256xi1>
    %225 = vector.broadcast %224 : vector<1x256xi1> to vector<8x256xi1>
    %226 = vector.broadcast %cst_174 : f32 to vector<8x256xf32>
    %227 = arith.select %225, %223, %226 : vector<8x256xi1>, vector<8x256xf32>
    %c64 = arith.constant 64 : index
    %c0_175 = arith.constant 0 : index
    %228 = vector.load %arg10[%c64, %c0_175] : memref<72x512xf32, #tpu.memory_space<vmem>>, vector<8x256xf32>
    tpu.vector_store %arg10[%c64, %c0_175], %227 {strides = array<i32>} : memref<72x512xf32, #tpu.memory_space<vmem>>, vector<8x256xf32>,
    %c1_176 = arith.constant 1 : index
    %c0_177 = arith.constant 0 : index
    %c0_178 = arith.constant 0 : index
    %229 = vector.load %arg8[%c1_176, %c0_177, %c0_178] : memref<2x8x290xf32, #tpu.memory_space<vmem>>, vector<1x8x256xf32>
    %230 = vector.shape_cast %229 : vector<1x8x256xf32> to vector<8x256xf32>
    %cst_179 = arith.constant 0.000000e+00 : f32
    %231 = vector.shape_cast %18 : vector<1x256xi1> to vector<1x256xi1>
    %232 = vector.broadcast %231 : vector<1x256xi1> to vector<8x256xi1>
    %233 = vector.broadcast %cst_179 : f32 to vector<8x256xf32>
    %234 = arith.select %232, %230, %233 : vector<8x256xi1>, vector<8x256xf32>
    %c0_180 = arith.constant 0 : index
    %c256_181 = arith.constant 256 : index
    %235 = vector.load %arg10[%c0_180, %c256_181] : memref<72x512xf32, #tpu.memory_space<vmem>>, vector<8x256xf32>
    tpu.vector_store %arg10[%c0_180, %c256_181], %234 {strides = array<i32>} : memref<72x512xf32, #tpu.memory_space<vmem>>, vector<8x256xf32>,
    %c1_182 = arith.constant 1 : index
    %c0_183 = arith.constant 0 : index
    %c1_184 = arith.constant 1 : index
    %236 = vector.load %arg8[%c1_182, %c0_183, %c1_184] : memref<2x8x290xf32, #tpu.memory_space<vmem>>, vector<1x8x256xf32>
    %237 = vector.shape_cast %236 : vector<1x8x256xf32> to vector<8x256xf32>
    %c8_185 = arith.constant 8 : index
    %c256_186 = arith.constant 256 : index
    %238 = vector.load %arg10[%c8_185, %c256_186] : memref<72x512xf32, #tpu.memory_space<vmem>>, vector<8x256xf32>
    tpu.vector_store %arg10[%c8_185, %c256_186], %237 {strides = array<i32>} : memref<72x512xf32, #tpu.memory_space<vmem>>, vector<8x256xf32>,
    %c1_187 = arith.constant 1 : index
    %c0_188 = arith.constant 0 : index
    %c2_189 = arith.constant 2 : index
    %239 = vector.load %arg8[%c1_187, %c0_188, %c2_189] : memref<2x8x290xf32, #tpu.memory_space<vmem>>, vector<1x8x256xf32>
    %240 = vector.shape_cast %239 : vector<1x8x256xf32> to vector<8x256xf32>
    %cst_190 = arith.constant 0.000000e+00 : f32
    %241 = vector.shape_cast %20 : vector<1x256xi1> to vector<1x256xi1>
    %242 = vector.broadcast %241 : vector<1x256xi1> to vector<8x256xi1>
    %243 = vector.broadcast %cst_190 : f32 to vector<8x256xf32>
    %244 = arith.select %242, %240, %243 : vector<8x256xi1>, vector<8x256xf32>
    %c16_191 = arith.constant 16 : index
    %c256_192 = arith.constant 256 : index
    %245 = vector.load %arg10[%c16_191, %c256_192] : memref<72x512xf32, #tpu.memory_space<vmem>>, vector<8x256xf32>
    tpu.vector_store %arg10[%c16_191, %c256_192], %244 {strides = array<i32>} : memref<72x512xf32, #tpu.memory_space<vmem>>, vector<8x256xf32>,
    %c1_193 = arith.constant 1 : index
    %c0_194 = arith.constant 0 : index
    %c16_195 = arith.constant 16 : index
    %246 = vector.load %arg8[%c1_193, %c0_194, %c16_195] : memref<2x8x290xf32, #tpu.memory_space<vmem>>, vector<1x8x256xf32>
    %247 = vector.shape_cast %246 : vector<1x8x256xf32> to vector<8x256xf32>
    %cst_196 = arith.constant 0.000000e+00 : f32
    %248 = vector.shape_cast %18 : vector<1x256xi1> to vector<1x256xi1>
    %249 = vector.broadcast %248 : vector<1x256xi1> to vector<8x256xi1>
    %250 = vector.broadcast %cst_196 : f32 to vector<8x256xf32>
    %251 = arith.select %249, %247, %250 : vector<8x256xi1>, vector<8x256xf32>
    %c24_197 = arith.constant 24 : index
    %c256_198 = arith.constant 256 : index
    %252 = vector.load %arg10[%c24_197, %c256_198] : memref<72x512xf32, #tpu.memory_space<vmem>>, vector<8x256xf32>
    tpu.vector_store %arg10[%c24_197, %c256_198], %251 {strides = array<i32>} : memref<72x512xf32, #tpu.memory_space<vmem>>, vector<8x256xf32>,
    %c1_199 = arith.constant 1 : index
    %c0_200 = arith.constant 0 : index
    %c17_201 = arith.constant 17 : index
    %253 = vector.load %arg8[%c1_199, %c0_200, %c17_201] : memref<2x8x290xf32, #tpu.memory_space<vmem>>, vector<1x8x256xf32>
    %254 = vector.shape_cast %253 : vector<1x8x256xf32> to vector<8x256xf32>
    %c32_202 = arith.constant 32 : index
    %c256_203 = arith.constant 256 : index
    %255 = vector.load %arg10[%c32_202, %c256_203] : memref<72x512xf32, #tpu.memory_space<vmem>>, vector<8x256xf32>
    tpu.vector_store %arg10[%c32_202, %c256_203], %254 {strides = array<i32>} : memref<72x512xf32, #tpu.memory_space<vmem>>, vector<8x256xf32>,
    %c1_204 = arith.constant 1 : index
    %c0_205 = arith.constant 0 : index
    %c18_206 = arith.constant 18 : index
    %256 = vector.load %arg8[%c1_204, %c0_205, %c18_206] : memref<2x8x290xf32, #tpu.memory_space<vmem>>, vector<1x8x256xf32>
    %257 = vector.shape_cast %256 : vector<1x8x256xf32> to vector<8x256xf32>
    %cst_207 = arith.constant 0.000000e+00 : f32
    %258 = vector.shape_cast %20 : vector<1x256xi1> to vector<1x256xi1>
    %259 = vector.broadcast %258 : vector<1x256xi1> to vector<8x256xi1>
    %260 = vector.broadcast %cst_207 : f32 to vector<8x256xf32>
    %261 = arith.select %259, %257, %260 : vector<8x256xi1>, vector<8x256xf32>
    %c40_208 = arith.constant 40 : index
    %c256_209 = arith.constant 256 : index
    %262 = vector.load %arg10[%c40_208, %c256_209] : memref<72x512xf32, #tpu.memory_space<vmem>>, vector<8x256xf32>
    tpu.vector_store %arg10[%c40_208, %c256_209], %261 {strides = array<i32>} : memref<72x512xf32, #tpu.memory_space<vmem>>, vector<8x256xf32>,
    %c1_210 = arith.constant 1 : index
    %c0_211 = arith.constant 0 : index
    %c32_212 = arith.constant 32 : index
    %263 = vector.load %arg8[%c1_210, %c0_211, %c32_212] : memref<2x8x290xf32, #tpu.memory_space<vmem>>, vector<1x8x256xf32>
    %264 = vector.shape_cast %263 : vector<1x8x256xf32> to vector<8x256xf32>
    %cst_213 = arith.constant 0.000000e+00 : f32
    %265 = vector.shape_cast %18 : vector<1x256xi1> to vector<1x256xi1>
    %266 = vector.broadcast %265 : vector<1x256xi1> to vector<8x256xi1>
    %267 = vector.broadcast %cst_213 : f32 to vector<8x256xf32>
    %268 = arith.select %266, %264, %267 : vector<8x256xi1>, vector<8x256xf32>
    %c48_214 = arith.constant 48 : index
    %c256_215 = arith.constant 256 : index
    %269 = vector.load %arg10[%c48_214, %c256_215] : memref<72x512xf32, #tpu.memory_space<vmem>>, vector<8x256xf32>
    tpu.vector_store %arg10[%c48_214, %c256_215], %268 {strides = array<i32>} : memref<72x512xf32, #tpu.memory_space<vmem>>, vector<8x256xf32>,
    %c1_216 = arith.constant 1 : index
    %c0_217 = arith.constant 0 : index
    %c33_218 = arith.constant 33 : index
    %270 = vector.load %arg8[%c1_216, %c0_217, %c33_218] : memref<2x8x290xf32, #tpu.memory_space<vmem>>, vector<1x8x256xf32>
    %271 = vector.shape_cast %270 : vector<1x8x256xf32> to vector<8x256xf32>
    %c56_219 = arith.constant 56 : index
    %c256_220 = arith.constant 256 : index
    %272 = vector.load %arg10[%c56_219, %c256_220] : memref<72x512xf32, #tpu.memory_space<vmem>>, vector<8x256xf32>
    tpu.vector_store %arg10[%c56_219, %c256_220], %271 {strides = array<i32>} : memref<72x512xf32, #tpu.memory_space<vmem>>, vector<8x256xf32>,
    %c1_221 = arith.constant 1 : index
    %c0_222 = arith.constant 0 : index
    %c34_223 = arith.constant 34 : index
    %273 = vector.load %arg8[%c1_221, %c0_222, %c34_223] : memref<2x8x290xf32, #tpu.memory_space<vmem>>, vector<1x8x256xf32>
    %274 = vector.shape_cast %273 : vector<1x8x256xf32> to vector<8x256xf32>
    %cst_224 = arith.constant 0.000000e+00 : f32
    %275 = vector.shape_cast %20 : vector<1x256xi1> to vector<1x256xi1>
    %276 = vector.broadcast %275 : vector<1x256xi1> to vector<8x256xi1>
    %277 = vector.broadcast %cst_224 : f32 to vector<8x256xf32>
    %278 = arith.select %276, %274, %277 : vector<8x256xi1>, vector<8x256xf32>
    %c64_225 = arith.constant 64 : index
    %c256_226 = arith.constant 256 : index
    %279 = vector.load %arg10[%c64_225, %c256_226] : memref<72x512xf32, #tpu.memory_space<vmem>>, vector<8x256xf32>
    tpu.vector_store %arg10[%c64_225, %c256_226], %278 {strides = array<i32>} : memref<72x512xf32, #tpu.memory_space<vmem>>, vector<8x256xf32>,
    %c0_227 = arith.constant 0 : index
    %c0_228 = arith.constant 0 : index
    %280 = vector.load %arg4[%c0_227, %c0_228] : memref<8x72xbf16, #tpu.memory_space<vmem>>, vector<8x72xbf16>
    %c0_229 = arith.constant 0 : index
    %c0_230 = arith.constant 0 : index
    %281 = vector.load %arg10[%c0_229, %c0_230] : memref<72x512xf32, #tpu.memory_space<vmem>>, vector<72x512xf32>
    %282 = arith.truncf %281 : vector<72x512xf32> to vector<72x512xbf16>
    %cst_231 = arith.constant dense<0.000000e+00> : vector<8x512xf32>
    %283 = tpu.matmul %280, %282, %cst_231 {dimension_numbers = #tpu.dot_dimension_numbers<[1], [0], [0], [1], [0, 0, 1, 1], [], []>} : vector<8x72xbf16>, vector<72x512xbf16>, vector<8x512xf32> -> vector<8x512xf32>
    %c0_232 = arith.constant 0 : index
    %c0_233 = arith.constant 0 : index
    %284 = vector.load %arg5[%c0_232, %c0_233] : memref<8x2xf32, #tpu.memory_space<vmem>>, vector<8x2xf32>
    %cst_234 = arith.constant dense<0.000000e+00> : vector<8xf32>
    %285 = vector.multi_reduction <add>, %283, %cst_234 [1] : vector<8x512xf32> to vector<8xf32>
    %286 = vector.shape_cast %285 : vector<8xf32> to vector<8x1xf32>
    %cst_235 = arith.constant 5.120000e+02 : f32
    %287 = vector.broadcast %cst_235 : f32 to vector<8x1xf32>
    %288 = arith.divf %286, %287 : vector<8x1xf32>
    %289 = vector.broadcast %288 : vector<8x1xf32> to vector<8x512xf32>
    %290 = arith.subf %283, %289 : vector<8x512xf32>
    %291 = arith.mulf %290, %290 : vector<8x512xf32>
    %cst_236 = arith.constant dense<0.000000e+00> : vector<8xf32>
    %292 = vector.multi_reduction <add>, %291, %cst_236 [1] : vector<8x512xf32> to vector<8xf32>
    %293 = vector.shape_cast %292 : vector<8xf32> to vector<8x1xf32>
    %cst_237 = arith.constant 5.120000e+02 : f32
    %294 = vector.broadcast %cst_237 : f32 to vector<8x1xf32>
    %295 = arith.divf %293, %294 : vector<8x1xf32>
    %296 = vector.extract_strided_slice %284 {offsets = [0, 0], sizes = [8, 1], strides = [1, 1]} : vector<8x2xf32> to vector<8x1xf32>
    %cst_238 = arith.constant 9.99999974E-6 : f32
    %297 = vector.broadcast %cst_238 : f32 to vector<8x1xf32>
    %298 = arith.addf %295, %297 : vector<8x1xf32>
    %299 = math.rsqrt %298 : vector<8x1xf32>
    %300 = arith.mulf %296, %299 : vector<8x1xf32>
    %301 = vector.extract_strided_slice %284 {offsets = [0, 1], sizes = [8, 1], strides = [1, 1]} : vector<8x2xf32> to vector<8x1xf32>
    %302 = arith.mulf %288, %300 : vector<8x1xf32>
    %303 = arith.subf %301, %302 : vector<8x1xf32>
    %304 = vector.broadcast %300 : vector<8x1xf32> to vector<8x512xf32>
    %305 = arith.mulf %283, %304 : vector<8x512xf32>
    %306 = vector.broadcast %303 : vector<8x1xf32> to vector<8x512xf32>
    %307 = arith.addf %305, %306 : vector<8x512xf32>
    %cst_239 = arith.constant 0.000000e+00 : f32
    %308 = vector.broadcast %cst_239 : f32 to vector<8x512xf32>
    %309 = arith.cmpf oge, %307, %308 : vector<8x512xf32>
    %cst_240 = arith.constant 0.00999999977 : f32
    %310 = vector.broadcast %cst_240 : f32 to vector<8x512xf32>
    %311 = arith.mulf %310, %307 : vector<8x512xf32>
    %312 = arith.select %309, %307, %311 : vector<8x512xi1>, vector<8x512xf32>
    %313 = vector.extract_strided_slice %312 {offsets = [0, 0], sizes = [8, 256], strides = [1, 1]} : vector<8x512xf32> to vector<8x256xf32>
    %c0_241 = arith.constant 0 : index
    %c0_242 = arith.constant 0 : index
    %c0_243 = arith.constant 0 : index
    %314 = vector.load %arg6[%c0_241, %c0_242, %c0_243] : memref<2x8x256xf32, #tpu.memory_space<vmem>>, vector<1x8x256xf32>
    %315 = vector.shape_cast %314 : vector<1x8x256xf32> to vector<8x256xf32>
    %316 = vector.shape_cast %313 : vector<8x256xf32> to vector<1x8x256xf32>
    tpu.vector_store %arg6[%c0_241, %c0_242, %c0_243], %316 {strides = array<i32>} : memref<2x8x256xf32, #tpu.memory_space<vmem>>, vector<1x8x256xf32>,
    %317 = vector.extract_strided_slice %312 {offsets = [0, 256], sizes = [8, 256], strides = [1, 1]} : vector<8x512xf32> to vector<8x256xf32>
    %c1_244 = arith.constant 1 : index
    %c0_245 = arith.constant 0 : index
    %c0_246 = arith.constant 0 : index
    %318 = vector.load %arg6[%c1_244, %c0_245, %c0_246] : memref<2x8x256xf32, #tpu.memory_space<vmem>>, vector<1x8x256xf32>
    %319 = vector.shape_cast %318 : vector<1x8x256xf32> to vector<8x256xf32>
    %320 = vector.shape_cast %317 : vector<8x256xf32> to vector<1x8x256xf32>
    tpu.vector_store %arg6[%c1_244, %c0_245, %c0_246], %320 {strides = array<i32>} : memref<2x8x256xf32, #tpu.memory_space<vmem>>, vector<1x8x256xf32>,
    return
  }
  func.func @transform_0(%arg0: i32) -> (i32, i32, i32) {
    %c0_i32 = arith.constant 0 : i32
    %c0_i32_0 = arith.constant 0 : i32
    %c0_i32_1 = arith.constant 0 : i32
    %c0_i32_2 = arith.constant 0 : i32
    return %c0_i32, %c0_i32_0, %c0_i32_1 : i32, i32, i32
  }
  func.func @transform_1(%arg0: i32) -> (i32, i32) {
    %c0_i32 = arith.constant 0 : i32
    %c0_i32_0 = arith.constant 0 : i32
    %c0_i32_1 = arith.constant 0 : i32
    return %c0_i32, %c0_i32_0 : i32, i32
  }
  func.func @transform_2(%arg0: i32) -> (i32, i32) {
    %c0_i32 = arith.constant 0 : i32
    %c0_i32_0 = arith.constant 0 : i32
    %c0_i32_1 = arith.constant 0 : i32
    return %c0_i32, %c0_i32_0 : i32, i32
  }
  func.func @transform_3(%arg0: i32) -> (i32, i32) {
    %c0_i32 = arith.constant 0 : i32
    %c0_i32_0 = arith.constant 0 : i32
    %c0_i32_1 = arith.constant 0 : i32
    return %c0_i32, %c0_i32_0 : i32, i32
  }
  func.func @transform_4(%arg0: i32) -> (i32, i32) {
    %c0_i32 = arith.constant 0 : i32
    %c0_i32_0 = arith.constant 0 : i32
    %c0_i32_1 = arith.constant 0 : i32
    return %c0_i32, %c0_i32_0 : i32, i32
  }
  func.func @transform_5(%arg0: i32) -> (i32, i32, i32) {
    %c0_i32 = arith.constant 0 : i32
    %c0_i32_0 = arith.constant 0 : i32
    %c0_i32_1 = arith.constant 0 : i32
    %c0_i32_2 = arith.constant 0 : i32
    return %c0_i32, %c0_i32_0, %c0_i32_1 : i32, i32, i32
  }
}

</mosaic_0001>

<bundles_post_ra>
// kernel: double_conv.1
= control target key start
LH: loop header
LB: loop body
LE: loop exit
PB: predicated region body
PF: predicated region fallthrough
CT: control target
= control target key end

     0   :  { %vm53_vm0 = vcmask 273408   ;;  %v1416_v1 = vmov 0.0   ;;  %s1417_s20 = smov 17   ;;  %v21_v3 = vlaneseq  ;;  %vm73_vm1 = vcmask 1043592   ;;  %s1419_s23 = smov 96   ;;  %s1980_s0 = inlined_call_operand.vmem [shape: f32[2,4,256], index: 0, kind: input, shape index: {}]   ;;  %s1981_s1 = inlined_call_operand.vmem [shape: bf16[8,36], index: 1, kind: input, shape index: {}]   ;;  %s1982_s2 = inlined_call_operand.vmem [shape: f32[8,2], index: 2, kind: input, shape index: {}]   ;;  %s1983_s3 = inlined_call_operand.vmem [shape: bf16[8,72], index: 3, kind: input, shape index: {}]   ;;  %s1984_s4 = inlined_call_operand.vmem [shape: f32[8,2], index: 4, kind: input, shape index: {}]   ;;  %s1985_s5 = inlined_call_operand.vmem [shape: f32[2,8,256], index: 5, kind: output, shape index: {}]  }
   0x1   :  { %v64_v0 = vld [vmem:[%s1980_s0] sm:$0xff]  ;;  %52 = vst [vmem:[#allocation2] sm:$0xff] %v1416_v1  ;;  %54 = vst.msk [vmem:[#allocation2 + $0x8] sm:$0xf] %vm53_vm0, %v1416_v1  ;;  %v1209_v2 = vld [vmem:[%s1980_s0 + $0x8] sm:$0xff]  ;;  %vm74_vm2 = vcmask 1047556  }
   0x2   :  { %55 = vst [vmem:[#allocation2 + $0xc] sm:$0xff] %v1416_v1  ;;  %56 = vst.msk [vmem:[#allocation2 + $0x14] sm:$0xf] %vm53_vm0, %v1416_v1  ;;  %66 = vrot.lane.b32.xlu0 %v64_v0, %s1417_s20  ;;  %vm69_vm3 = vcmask 138240   ;;  %vm77_vm4 = vcmask 134144   ;;  %v1474_v6 = vand.u32 127, %v21_v3 }
   0x3   :  { %57 = vst [vmem:[#allocation3] sm:$0xff] %v1416_v1  ;;  %61 = vst [vmem:[#allocation3 + $0x18] sm:$0xff] %v1416_v1  ;;  %s1418_s0 = smov 94   ;;  %s1420_s24 = smov 110   ;;  %v1426_v42 = vmov 0   ;;  %vm248_vm8 = vcmask 777216  }
   0x4   :  { %vm75_vm5 = vmor %vm74_vm2, %vm73_vm1  ;;  %v1478_v10 = vadd.s32 128, %v1474_v6  ;;  %v28_v11 = vand.u32 15, %v1474_v6  ;;  %s1421_s25 = smov 112   ;;  %s1422_s26 = smov 111   ;;  %525 = vmatprep.mubr.bf16.mxu0 %v1426_v42  ;;  %566 = vmatprep.mubr.bf16.mxu1 %v1426_v42  ;;  %vm1986_vm9 = vcmask 1039360   ;;  %vm227_vm10 = vcmask 785408  }
   0x5   :  { %s1423_s27 = smov 126   ;;  %s1424_s28 = smov 95   ;;  %1282 = vset.pattern.permute.xlu1 %v1426_v42  ;;  %vm1987_vm11 = vcmask 916480   ;;  %vm201_vm12 = vcmask 900096   ;;  %vm266_vm15 = vcmask 769024   ;;  %vm137_vm0 = vcmask 1031168  }
   0x6   :  { %82 = vrot.lane.b32.xlu0 %v1209_v2, %s1417_s20  ;;  %v35_v13 = vand.u32 15, %v1478_v10  ;;  %vm1485_vm6 = vcmp.ne.s32.totalorder %v28_v11, 0  ;;  %s1425_s29 = smov 127   ;;  %vm1662_vm13 = vcmp.ne.s32.totalorder %v28_v11, 15  ;;  %vm183_vm1 = vcmask 908288   ;;  %s1428_s8 = smov 1  }
   0x7   :  { %vm480_vm2 = vcmask 1041408   ;;  %v984_v16 = vld [vmem:[%s1983_s3] sm:$0xf] }
   0x8   :  { %vm1499_vm7 = vcmp.ne.s32.totalorder %v35_v13, 0  ;;  %vm1668_vm14 = vcmp.ne.s32.totalorder %v35_v13, 15 }
  0x74   :  { %v67_v4 = vpop.permute.xlu0 %66 }
  0x75   :  { %v68_v5 = vrot.slane %v67_v4, 4 }
  0x77   :  { %v70_v7 = vsel %vm69_vm3, %v68_v5, %v67_v4  ;;  %78 = vst.msk [vmem:[#allocation2 + $0x8] sm:$0xf] %vm77_vm4, %v68_v5 }
  0x78   :  { %76 = vst.msk [vmem:[#allocation2] sm:$0xff] %vm75_vm5, %v70_v7  ;;  %v83_v8 = vpop.permute.xlu0 %82 }
  0x79   :  { %v84_v9 = vrot.slane %v83_v8, 4 }
  0x7b   :  { %v85_v12 = vsel %vm69_vm3, %v84_v9, %v83_v8  ;;  %90 = vst.msk [vmem:[#allocation2 + $0x14] sm:$0xf] %vm77_vm4, %v84_v9  ;;  %vm476_vm4 = vcmask 293888  }
  0x7c   :  { %89 = vst.msk [vmem:[#allocation2 + $0xc] sm:$0xff] %vm75_vm5, %v85_v12  ;;  %vm59_vm5 = vcmask 277504  }
  0x7d   :  { %60 = vst.msk [vmem:[#allocation3 + $0x10] sm:$0xff] %vm59_vm5, %v1416_v1  ;;  %63 = vst.msk [vmem:[#allocation3 + $0x28] sm:$0xff] %vm59_vm5, %v1416_v1 }
  0x7e   :  { %v256_v14 = vld [vmem:[#allocation2 + $0x8] sm:$0xf] }
  0x7f   :  { %v217_v15 = vld [vmem:[#allocation2 + $0x8] sm:$0xf]  ;;  %264 = vrot.lane.b32.xlu0 %v256_v14, %s1418_s0  ;;  %v1491_v17 = vld [vmem:[#allocation2] sm:$0xff] }
  0x80   :  { %225 = vrot.lane.b32.xlu1 %v217_v15, %s1419_s23  ;;  %v1495_v18 = vcombine.high %v1491_v17, %v1491_v17  ;;  %v99_v20 = vsel %vm1485_vm6, %v1491_v17, 0.0  ;;  %v191_v21 = vld [vmem:[#allocation2 + $0x8] sm:$0xf]  ;;  %v240_v40 = vcombine.low %v1491_v17, %v1491_v17 }
  0x81   :  { %v147_v22 = vld [vmem:[#allocation2 + $0x8] sm:$0xf]  ;;  %101 = vst [vmem:[#allocation4] sm:$0xf] %v99_v20 }
  0x82   :  { %v425_v23 = vld [vmem:[#allocation2 + $0x14] sm:$0xf]  ;;  %v100_v26 = vsel %vm1499_vm7, %v1495_v18, 0.0  ;;  %v173_v30 = vld [vmem:[#allocation2 + $0x8] sm:$0xf] }
  0x83   :  { %199 = vrot.lane.b32.xlu0 %v191_v21, %s1420_s24  ;;  %v363_v24 = vld [vmem:[#allocation2 + $0x14] sm:$0xf]  ;;  %v1508_v25 = vld [vmem:[#allocation2 + $0xc] sm:$0xff]  ;;  %102 = vst [vmem:[#allocation4 + $0x68] sm:$0xf] %v100_v26 }
  0x84   :  { %155 = vrot.lane.b32.xlu1 %v147_v22, %s1421_s25  ;;  %v1515_v27 = vcombine.high %v1508_v25, %v1508_v25  ;;  %v279_v28 = vsel %vm1485_vm6, %v1508_v25, 0.0  ;;  %v123_v31 = vld [vmem:[#allocation2 + $0x8] sm:$0xf]  ;;  %v388_v32 = vld [vmem:[#allocation2 + $0x14] sm:$0xf]  ;;  %v410_v41 = vcombine.low %v1508_v25, %v1508_v25 }
  0x85   :  { %281 = vst [vmem:[#allocation4 + $0x48] sm:$0xf] %v279_v28  ;;  %v346_v33 = vld [vmem:[#allocation2 + $0x14] sm:$0xf]  ;;  %v1408_v36 = vld [vmem:[#allocation2 + $0x8] ss:$0 sps:$4 sm:$0xff]  }
  0x86   :  { %v280_v29 = vsel %vm1499_vm7, %v1515_v27, 0.0  ;;  %v321_v34 = vld [vmem:[#allocation2 + $0x14] sm:$0xf]  ;;  %v1409_v37 = vld [vmem:[#allocation2 + $0x8] ss:$0 sps:$4 sm:$0xff]  }
  0x87   :  { %433 = vrot.lane.b32.xlu0 %v425_v23, %s1418_s0  ;;  %282 = vst [vmem:[#allocation4 + $0x80] sm:$0xf] %v280_v29  ;;  %v302_v35 = vld [vmem:[#allocation2 + $0x14] sm:$0xf] }
  0x88   :  { %371 = vrot.lane.b32.xlu1 %v363_v24, %s1420_s24  ;;  %v1410_v38 = vld [vmem:[#allocation2 + $0x14] ss:$0 sps:$4 sm:$0xff]  }
  0x89   :  { %v1411_v39 = vld [vmem:[#allocation2 + $0x14] ss:$0 sps:$4 sm:$0xff]  }
  0x8b   :  { %181 = vrot.lane.b32.xlu0 %v173_v30, %s1422_s26 }
  0x8c   :  { %135 = vrot.lane.b32.xlu1 %v123_v31, %s1423_s27 }
  0x8f   :  { %354 = vrot.lane.b32.xlu0 %v346_v33, %s1422_s26 }
  0x90   :  { %396 = vrot.lane.b32.xlu1 %v388_v32, %s1419_s23 }
  0x93   :  { %329 = vrot.lane.b32.xlu0 %v321_v34, %s1421_s25 }
  0x94   :  { %310 = vrot.lane.b32.xlu1 %v302_v35, %s1423_s27 }
  0x97   :  { %429 = vrot.lane.b32.xlu0 %v1508_v25, %s1418_s0 }
  0x98   :  { %260 = vrot.lane.b32.xlu1 %v1491_v17, %s1418_s0 }
  0x9b   :  { %244 = vrot.lane.b32.xlu0 %v1491_v17, %s1424_s28 }
  0x9c   :  { %195 = vrot.lane.b32.xlu1 %v1491_v17, %s1420_s24 }
  0x9f   :  { %177 = vrot.lane.b32.xlu0 %v1491_v17, %s1422_s26 }
  0xa0   :  { %221 = vrot.lane.b32.xlu1 %v1491_v17, %s1419_s23 }
  0xa3   :  { %151 = vrot.lane.b32.xlu0 %v1491_v17, %s1421_s25 }
  0xa4   :  { %367 = vrot.lane.b32.xlu1 %v1508_v25, %s1420_s24 }
  0xa7   :  { %111 = vrot.lane.b32.xlu0 %v1491_v17, %s1425_s29 }
  0xa8   :  { %392 = vrot.lane.b32.xlu1 %v1508_v25, %s1419_s23 }
  0xab   :  { %131 = vrot.lane.b32.xlu0 %v1491_v17, %s1423_s27 }
  0xac   :  { %350 = vrot.lane.b32.xlu1 %v1508_v25, %s1422_s26 }
  0xaf   :  { %414 = vrot.lane.b32.xlu0 %v1508_v25, %s1424_s28 }
  0xb0   :  { %325 = vrot.lane.b32.xlu1 %v1508_v25, %s1421_s25 }
  0xb3   :  { %291 = vrot.lane.b32.xlu0 %v1508_v25, %s1425_s29 }
  0xb4   :  { %246 = vrot.lane.b32.xlu1 %v1408_v36, %s1424_s28 }
  0xb7   :  { %223 = vrot.lane.b32.xlu0 %v1495_v18, %s1419_s23 }
  0xb8   :  { %113 = vrot.lane.b32.xlu1 %v1409_v37, %s1425_s29 }
  0xbb   :  { %153 = vrot.lane.b32.xlu0 %v1495_v18, %s1421_s25 }
  0xbc   :  { %416 = vrot.lane.b32.xlu1 %v1410_v38, %s1424_s28 }
  0xbf   :  { %369 = vrot.lane.b32.xlu0 %v1515_v27, %s1420_s24 }
  0xc0   :  { %293 = vrot.lane.b32.xlu1 %v1411_v39, %s1425_s29 }
  0xc3   :  { %133 = vrot.lane.b32.xlu0 %v1495_v18, %s1423_s27 }
  0xc4   :  { %262 = vrot.lane.b32.xlu1 %v1495_v18, %s1418_s0 }
  0xc7   :  { %394 = vrot.lane.b32.xlu0 %v1515_v27, %s1419_s23 }
  0xc8   :  { %197 = vrot.lane.b32.xlu1 %v1495_v18, %s1420_s24 }
  0xcb   :  { %109 = vrot.lane.b32.xlu0 %v240_v40, %s1425_s29 }
  0xcc   :  { %431 = vrot.lane.b32.xlu1 %v1515_v27, %s1418_s0 }
  0xcf   :  { %412 = vrot.lane.b32.xlu0 %v410_v41, %s1424_s28 }
  0xd0   :  { %179 = vrot.lane.b32.xlu1 %v1495_v18, %s1422_s26 }
  0xd3   :  { %308 = vrot.lane.b32.xlu0 %v1515_v27, %s1423_s27 }
  0xd4   :  { %242 = vrot.lane.b32.xlu1 %v240_v40, %s1424_s28 }
  0xd7   :  { %306 = vrot.lane.b32.xlu0 %v1508_v25, %s1423_s27 }
  0xd8   :  { %352 = vrot.lane.b32.xlu1 %v1515_v27, %s1422_s26 }
  0xdc   :  { %327 = vrot.lane.b32.xlu1 %v1515_v27, %s1421_s25 }
  0xe0   :  { %289 = vrot.lane.b32.xlu1 %v410_v41, %s1425_s29 }
  0xf1   :  { %v1602_v44 = vpop.permute.xlu0 %264 }
  0xf2   :  { %v226_v43 = vpop.permute.xlu1 %225 }
  0xf5   :  { %v1604_v46 = vpop.permute.xlu0 %199 }
  0xf6   :  { %v156_v45 = vpop.permute.xlu1 %155 }
  0xf9   :  { %v1606_v48 = vpop.permute.xlu0 %433 }
  0xfa   :  { %v372_v47 = vpop.permute.xlu1 %371 }
  0xfd   :  { %v1610_v50 = vpop.permute.xlu0 %181 }
  0xfe   :  { %v1608_v49 = vpop.permute.xlu1 %135 }
 0x101   :  { %v1614_v52 = vpop.permute.xlu0 %354 }
 0x102   :  { %v1612_v51 = vpop.permute.xlu1 %396 }
 0x105   :  { %v1618_v54 = vpop.permute.xlu0 %329 }
 0x106   :  { %v1616_v53 = vpop.permute.xlu1 %310 }
 0x109   :  { %v1622_v56 = vpop.permute.xlu0 %429 }
 0x10a   :  { %v1620_v55 = vpop.permute.xlu1 %260 }
 0x10d   :  { %v1626_v58 = vpop.permute.xlu0 %244 }
 0x10e   :  { %v1624_v57 = vpop.permute.xlu1 %195 }
 0x111   :  { %v1628_v60 = vpop.permute.xlu0 %177 }
 0x112   :  { %v222_v59 = vpop.permute.xlu1 %221 }
 0x115   :  { %v152_v62 = vpop.permute.xlu0 %151 }
 0x116   :  { %v368_v61 = vpop.permute.xlu1 %367 }
 0x119   :  { %v1632_v0 = vpop.permute.xlu0 %111 }
 0x11a   :  { %v1630_v63 = vpop.permute.xlu1 %392 }
 0x11d   :  { %v132_v3 = vpop.permute.xlu0 %131 }
 0x11e   :  { %v1634_v2 = vpop.permute.xlu1 %350 }
 0x121   :  { %v1638_v5 = vpop.permute.xlu0 %414 }
 0x122   :  { %v1636_v4 = vpop.permute.xlu1 %325 }
 0x125   :  { %v1640_v8 = vpop.permute.xlu0 %291 }
 0x126   :  { %v247_v7 = vpop.permute.xlu1 %246 }
 0x127   :  { %v250_v9 = vsel %vm248_vm8, %v1626_v58, %v247_v7 }
 0x128   :  { %254 = vst [vmem:[#allocation4 + $0x70] sm:$0xf0] %v250_v9 }
 0x129   :  { %v224_v14 = vpop.permute.xlu0 %223 }
 0x12a   :  { %v114_v12 = vpop.permute.xlu1 %113  ;;  %v228_v17 = vsel %vm227_vm10, %v222_v59, %v224_v14  ;;  %v229_v18 = vsel %vm227_vm10, %v224_v14, %v226_v43 }
 0x12b   :  { %v117_v15 = vsel %vm1986_vm9, %v1632_v0, %v114_v12  ;;  %v232_v20 = vsel %vm1485_vm6, %v228_v17, 0.0  ;;  %v233_v21 = vsel %vm1499_vm7, %v229_v18, 0.0 }
 0x12c   :  { %121 = vst [vmem:[#allocation4 + $0x68] sm:$0xf0] %v117_v15  ;;  %234 = vst [vmem:[#allocation4 + $0x58] sm:$0xf] %v232_v20 }
 0x12d   :  { %235 = vst [vmem:[#allocation4 + $0x70] sm:$0xf] %v233_v21  ;;  %v154_v23 = vpop.permute.xlu0 %153 }
 0x12e   :  { %v417_v22 = vpop.permute.xlu1 %416  ;;  %v158_v25 = vsel %vm1987_vm11, %v152_v62, %v154_v23  ;;  %v159_v26 = vsel %vm1987_vm11, %v154_v23, %v156_v45 }
 0x12f   :  { %v419_v24 = vsel %vm248_vm8, %v1638_v5, %v417_v22  ;;  %v162_v27 = vsel %vm1485_vm6, %v158_v25, 0.0  ;;  %v163_v28 = vsel %vm1499_vm7, %v159_v26, 0.0 }
 0x130   :  { %423 = vst [vmem:[#allocation4 + $0x88] sm:$0xf0] %v419_v24  ;;  %v166_v31 = vrot.slane %v162_v27, 4  ;;  %v167_v32 = vrot.slane %v163_v28, 4 }
 0x131   :  { %v370_v34 = vpop.permute.xlu0 %369 }
 0x132   :  { %v294_v33 = vpop.permute.xlu1 %293  ;;  %170 = vst [vmem:[#allocation4 + $0x10] sm:$0xf0] %v166_v31  ;;  %171 = vst [vmem:[#allocation4 + $0x28] sm:$0xf0] %v167_v32  ;;  %v373_v6 = vsel %vm201_vm12, %v368_v61, %v370_v34  ;;  %v374_v11 = vsel %vm201_vm12, %v370_v34, %v372_v47 }
 0x133   :  { %v296_v35 = vsel %vm1986_vm9, %v1640_v8, %v294_v33  ;;  %v377_v10 = vsel %vm1662_vm13, %v373_v6, 0.0  ;;  %v378_v13 = vsel %vm1668_vm14, %v374_v11, 0.0 }
 0x134   :  { %300 = vst [vmem:[#allocation4 + $0x80] sm:$0xf0] %v296_v35  ;;  %v381_v36 = vrot.slane %v377_v10, 4  ;;  %v382_v37 = vrot.slane %v378_v13, 4 }
 0x135   :  { %v134_v39 = vpop.permute.xlu0 %133 }
 0x136   :  { %v263_v38 = vpop.permute.xlu1 %262  ;;  %385 = vst [vmem:[#allocation4 + $0x98] sm:$0xf0] %v381_v36  ;;  %386 = vst [vmem:[#allocation4 + $0x30] sm:$0xf0] %v382_v37  ;;  %v138_v43 = vsel %vm137_vm0, %v132_v3, %v134_v39  ;;  %v139_v45 = vsel %vm137_vm0, %v134_v39, %v1608_v49 }
 0x137   :  { %v267_v40 = vsel %vm266_vm15, %v1620_v55, %v263_v38  ;;  %v268_v41 = vsel %vm266_vm15, %v263_v38, %v1602_v44  ;;  %v142_v61 = vsel %vm1662_vm13, %v138_v43, 0.0  ;;  %v143_v55 = vsel %vm1668_vm14, %v139_v45, 0.0 }
 0x138   :  { %v271_v47 = vsel %vm1662_vm13, %v267_v40, 0.0  ;;  %v272_v59 = vsel %vm1668_vm14, %v268_v41, 0.0  ;;  %144 = vst [vmem:[#allocation4 + $0x10] sm:$0xf] %v142_v61  ;;  %145 = vst [vmem:[#allocation4 + $0x28] sm:$0xf] %v143_v55 }
 0x139   :  { %273 = vst [vmem:[#allocation4 + $0x8] sm:$0xf] %v271_v47  ;;  %274 = vst [vmem:[#allocation4 + $0x78] sm:$0xf] %v272_v59  ;;  %v395_v62 = vpop.permute.xlu0 %394  ;;  %v457_v40 = vld [vmem:[#allocation4 + $0x70] sm:$0xff] }
 0x13a   :  { %v198_v44 = vpop.permute.xlu1 %197  ;;  %v398_v7 = vsel %vm227_vm10, %v1630_v63, %v395_v62  ;;  %v399_v9 = vsel %vm227_vm10, %v395_v62, %v1612_v51 }
 0x13b   :  { %v202_v49 = vsel %vm201_vm12, %v1624_v57, %v198_v44  ;;  %v203_v3 = vsel %vm201_vm12, %v198_v44, %v1604_v46  ;;  %v402_v15 = vsel %vm1485_vm6, %v398_v7, 0.0  ;;  %v403_v57 = vsel %vm1499_vm7, %v399_v9, 0.0 }
 0x13c   :  { %v206_v12 = vsel %vm1662_vm13, %v202_v49, 0.0  ;;  %v207_v14 = vsel %vm1668_vm14, %v203_v3, 0.0  ;;  %404 = vst [vmem:[#allocation4 + $0x40] sm:$0xf] %v402_v15  ;;  %405 = vst [vmem:[#allocation4 + $0x88] sm:$0xf] %v403_v57 }
 0x13d   :  { %v210_v17 = vrot.slane %v206_v12, 4  ;;  %v211_v46 = vrot.slane %v207_v14, 4  ;;  %v110_v18 = vpop.permute.xlu0 %109  ;;  %v445_v49 = vld [vmem:[#allocation4 + $0x68] sm:$0xff] }
 0x13e   :  { %v432_v63 = vpop.permute.xlu1 %431  ;;  %v116_v21 = vsel %vm1986_vm9, %v110_v18, %v1632_v0 }
 0x13f   :  { %214 = vst [vmem:[#allocation4 + $0x60] sm:$0xf0] %v210_v17  ;;  %215 = vst [vmem:[#allocation4 + $0x38] sm:$0xf0] %v211_v46  ;;  %v435_v51 = vsel %vm266_vm15, %v1622_v56, %v432_v63  ;;  %v436_v20 = vsel %vm266_vm15, %v432_v63, %v1606_v48  ;;  %v449_v45 = vld [vmem:[#allocation4 + $0x28] sm:$0xff] }
 0x140   :  { %v439_v22 = vsel %vm1662_vm13, %v435_v51, 0.0  ;;  %v440_v23 = vsel %vm1668_vm14, %v436_v20, 0.0  ;;  %120 = vst [vmem:[#allocation4] sm:$0xf0] %v116_v21  ;;  %v461_v24 = vld [vmem:[#allocation4 + $0x78] sm:$0xf]  ;;  %v465_v9 = vpack.c.bf16 %v449_v45, %v445_v49 }
 0x141   :  { %v460_v25 = vld [vmem:[#allocation4 + $0x8] sm:$0xf]  ;;  %441 = vst [vmem:[#allocation4 + $0x50] sm:$0xf] %v439_v22  ;;  %442 = vst [vmem:[#allocation4 + $0x90] sm:$0xf] %v440_v23  ;;  %v473_v26 = vpack.c.bf16 %v461_v24, %v461_v24  ;;  %v413_v28 = vpop.permute.xlu0 %412 }
 0x142   :  { %v472_v56 = vpack.c.bf16 %v460_v25, %v460_v25  ;;  %v180_v27 = vpop.permute.xlu1 %179  ;;  %v418_v31 = vsel %vm248_vm8, %v413_v28, %v1638_v5  ;;  %v443_v20 = vld [vmem:[%s1981_s1] sm:$0xf]  ;;  %v447_v21 = vld [vmem:[#allocation4 + $0x80] sm:$0xff] }
 0x143   :  { %v184_v48 = vsel %vm183_vm1, %v1628_v60, %v180_v27  ;;  %v185_v0 = vsel %vm183_vm1, %v180_v27, %v1610_v50  ;;  %1210 = vmatprep.subr.msk.bf16.mxu0 %vm480_vm2, %v473_v26  ;;  %422 = vst [vmem:[#allocation4 + $0x40] sm:$0xf0] %v418_v31  ;;  %v459_v15 = vld [vmem:[#allocation4 + $0x88] sm:$0xff] }
 0x144   :  { %v482_v32 = vsel %vm480_vm2, %v472_v56, 0  ;;  %188 = vst [vmem:[#allocation4 + $0x60] sm:$0xf] %v184_v48  ;;  %189 = vst [vmem:[#allocation4 + $0x38] sm:$0xf] %v185_v0 }
 0x145   :  { %504 = vmatpush1.bf16.msra.mxu0 %v482_v32  ;;  %v309_v34 = vpop.permute.xlu0 %308 }
 0x146   :  { %v243_v33 = vpop.permute.xlu1 %242  ;;  %v313_v60 = vsel %vm137_vm0, %v309_v34, %v1616_v53 }
 0x147   :  { %v249_v35 = vsel %vm248_vm8, %v243_v33, %v1626_v58  ;;  %v317_v50 = vsel %vm1668_vm14, %v313_v60, 0.0  ;;  %v444_v12 = vld [vmem:[#allocation4] sm:$0xff] }
 0x148   :  { %253 = vst [vmem:[#allocation4 + $0x58] sm:$0xf0] %v249_v35  ;;  %v463_v5 = vld [vmem:[#allocation4 + $0x90] sm:$0xf]  ;;  %319 = vst [vmem:[#allocation4 + $0x20] sm:$0xf] %v317_v50 }
 0x149   :  { %v462_v6 = vld [vmem:[#allocation4 + $0x50] sm:$0xf]  ;;  %v475_v11 = vpack.c.bf16 %v463_v5, %v463_v5  ;;  %v307_v36 = vpop.permute.xlu0 %306 }
 0x14a   :  { %v474_v10 = vpack.c.bf16 %v462_v6, %v462_v6  ;;  %v353_v13 = vpop.permute.xlu1 %352  ;;  %v312_v38 = vsel %vm137_vm0, %v307_v36, %v309_v34  ;;  %v458_v46 = vld [vmem:[#allocation4 + $0x40] sm:$0xff] }
 0x14b   :  { %v356_v37 = vsel %vm183_vm1, %v1634_v2, %v353_v13  ;;  %v357_v58 = vsel %vm183_vm1, %v353_v13, %v1614_v52  ;;  %1212 = vmatprep.subr.msk.bf16.mxu1 %vm480_vm2, %v475_v11  ;;  %v453_v39 = vld [vmem:[#allocation4 + $0x38] sm:$0xff]  ;;  %v316_v41 = vsel %vm1662_vm13, %v312_v38, 0.0  ;;  %v452_v59 = vld [vmem:[#allocation4 + $0x60] sm:$0xff] }
 0x14c   :  { %v488_v53 = vsel %vm480_vm2, %v474_v10, 0  ;;  %360 = vst [vmem:[#allocation4 + $0x98] sm:$0xf] %v356_v37  ;;  %361 = vst [vmem:[#allocation4 + $0x30] sm:$0xf] %v357_v58  ;;  %v469_v43 = vpack.c.bf16 %v457_v40, %v453_v39 }
 0x14d   :  { %545 = vmatpush1.bf16.msra.mxu1 %v488_v53  ;;  %318 = vst [vmem:[#allocation4 + $0x18] sm:$0xf] %v316_v41 }
 0x14e   :  { %v328_v2 = vpop.permute.xlu1 %327  ;;  %505 = vmatprep.subr.bf16.mxu0 %v469_v43  ;;  %v1427_v43 = vmov 1  }
 0x14f   :  { %v331_v52 = vsel %vm1987_vm11, %v1636_v4, %v328_v2  ;;  %v332_v47 = vsel %vm1987_vm11, %v328_v2, %v1618_v54  ;;  %v456_v61 = vld [vmem:[#allocation4 + $0x58] sm:$0xff]  ;;  %v448_v4 = vld [vmem:[#allocation4 + $0x10] sm:$0xff]  ;;  %1283 = vset.pattern.permute.xlu0 %v1427_v43  ;;  %vm646_vm11 = vcmask 1047688  }
 0x150   :  { %v335_v55 = vsel %vm1485_vm6, %v331_v52, 0.0  ;;  %v336_v44 = vsel %vm1499_vm7, %v332_v47, 0.0  ;;  %v468_v62 = vpack.c.bf16 %v456_v61, %v452_v59  ;;  %v464_v63 = vpack.c.bf16 %v448_v4, %v444_v12  ;;  %v575_v2 = vld [vmem:[%s1982_s2] sm:$0xff] }
 0x151   :  { %v339_v3 = vrot.slane %v335_v55, 4  ;;  %v340_v7 = vrot.slane %v336_v44, 4 }
 0x152   :  { %v290_v14 = vpop.permute.xlu1 %289  ;;  %506 = vmatpush1.bf16.msra.mxu0 %v468_v62 }
 0x153   :  { %343 = vst [vmem:[#allocation4 + $0x18] sm:$0xf0] %v339_v3  ;;  %344 = vst [vmem:[#allocation4 + $0x20] sm:$0xf0] %v340_v7  ;;  %v295_v54 = vsel %vm1986_vm9, %v290_v14, %v1640_v8  ;;  %507 = vmatprep.subr.bf16.mxu0 %v465_v9  ;;  %v455_v57 = vld [vmem:[#allocation4 + $0x30] sm:$0xff]  ;;  %v454_v17 = vld [vmem:[#allocation4 + $0x98] sm:$0xff] }
 0x154   :  { %299 = vst [vmem:[#allocation4 + $0x48] sm:$0xf0] %v295_v54  ;;  %v471_v18 = vpack.c.bf16 %v459_v15, %v455_v57  ;;  %v470_v51 = vpack.c.bf16 %v458_v46, %v454_v17 }
 0x156   :  { %508 = vmatpush1.bf16.msra.mxu0 %v464_v63  ;;  %546 = vmatprep.subr.bf16.mxu1 %v471_v18 }
 0x157   :  { %547 = vmatpush1.bf16.msra.mxu1 %v470_v51 }
 0x159   :  { %1211 = vmatmul.mubr.msk.bf16.vlgmr.msra.gmra.mxu0 %vm476_vm4, %v443_v20 }
 0x15a   :  { %v451_v22 = vld [vmem:[#allocation4 + $0x20] sm:$0xff]  ;;  %v450_v8 = vld [vmem:[#allocation4 + $0x18] sm:$0xff]  ;;  %1090 = vmatprep.mubr.bf16.mxu0 %v1426_v42 }
 0x15b   :  { %v467_v23 = vpack.c.bf16 %v451_v22, %v447_v21  ;;  %v446_v24 = vld [vmem:[#allocation4 + $0x48] sm:$0xff] }
 0x15c   :  { %v466_v25 = vpack.c.bf16 %v450_v8, %v446_v24 }
 0x15d   :  { %548 = vmatprep.subr.bf16.mxu1 %v467_v23 }
 0x15e   :  { %549 = vmatpush1.bf16.msra.mxu1 %v466_v25 }
 0x161   :  { %1213 = vmatmul.mubr.msk.bf16.vlgmr.msra.gmra.mxu1 %vm476_vm4, %v443_v20 }
 0x162   :  { %1131 = vmatprep.mubr.bf16.mxu1 %v1426_v42 }
 0x219   :  { %v527_v26 = vpop.f32.mrf.mxu0 }
 0x21b   :  { %v529_v56 = vpop.f32.mrf.mxu0 }
 0x21c   :  { %v576_v48 = vadd.f32 %v529_v56, %v527_v26 }
 0x21d   :  { %v531_v27 = vpop.f32.mrf.mxu0 }
 0x21f   :  { %v532_v28 = vpop.f32.mrf.mxu0 }
 0x221   :  { %v568_v0 = vpop.f32.mrf.mxu1 }
 0x222   :  { %v577_v31 = vadd.f32 %v576_v48, %v568_v0 }
 0x223   :  { %v570_v32 = vpop.f32.mrf.mxu1 }
 0x224   :  { %v578_v33 = vadd.f32 %v577_v31, %v570_v32 }
 0x225   :  { %v572_v34 = vpop.f32.mrf.mxu1 }
 0x226   :  { %579 = vadd.xlane.f32.xlu0 %v578_v33 }
 0x227   :  { %v573_v35 = vpop.f32.mrf.mxu1 }
 0x2af   :  { %v580_v60 = vpop.xlane.xlu0 %579 }
 0x2b0   :  { %v582_v50 = vmul.f32 0.001953125, %v580_v60 }
 0x2b2   :  { %v583_v5 = vsub.f32 %v527_v26, %v582_v50  ;;  %v584_v6 = vsub.f32 %v529_v56, %v582_v50  ;;  %v585_v11 = vsub.f32 %v568_v0, %v582_v50  ;;  %v586_v10 = vsub.f32 %v570_v32, %v582_v50 }
 0x2b4   :  { %v587_v13 = vmul.f32 %v583_v5, %v583_v5  ;;  %v588_v42 = vmul.f32 %v584_v6, %v584_v6  ;;  %v589_v36 = vmul.f32 %v585_v11, %v585_v11  ;;  %v590_v58 = vmul.f32 %v586_v10, %v586_v10 }
 0x2b6   :  { %v591_v37 = vadd.f32 %v588_v42, %v587_v13 }
 0x2b8   :  { %v592_v38 = vadd.f32 %v591_v37, %v589_v36 }
 0x2ba   :  { %v593_v53 = vadd.f32 %v592_v38, %v590_v58 }
 0x2bc   :  { %594 = vadd.xlane.f32.xlu1 %v593_v53 }
 0x345   :  { %v595_v39 = vpop.xlane.xlu1 %594 }
 0x346   :  { %v596_v40 = vmul.f32 0.001953125, %v595_v39 }
 0x348   :  { %v597_v41 = vadd.f32 1e-05, %v596_v40 }
 0x34a   :  { %1412 = vrsqrt.f32 %v597_v41 }
 0x357   :  { %v1413_v45 = vpop.eup %1412 }
 0x358   :  { %v599_v52 = vmul.f32 %v1413_v45, %v575_v2 }
 0x35a   :  { %608 = vperm.xlu1 %1282, %v599_v52   ;;  %v600_v47 = vmul.f32 %v599_v52, %v582_v50 }
 0x35c   :  { %602 = vrot.lane.b32.xlu0 %v600_v47, %s1428_s8 }
 0x3ce   :  { %v603_v59 = vpop.permute.xlu0 %602 }
 0x3cf   :  { %v605_v61 = vsub.f32 %v575_v2, %v603_v59 }
 0x3d1   :  { %617 = vperm.xlu0 %1283, %v605_v61  }
 0x3d5   :  { %v609_v55 = vpop.permute.xlu1 %608 }
 0x3d6   :  { %v611_v44 = vmul.f32 %v609_v55, %v527_v26  ;;  %v612_v62 = vmul.f32 %v609_v55, %v529_v56  ;;  %v613_v49 = vmul.f32 %v609_v55, %v568_v0  ;;  %v614_v14 = vmul.f32 %v609_v55, %v570_v32 }
 0x44c   :  { %v618_v3 = vpop.permute.xlu0 %617 }
 0x44d   :  { %v620_v7 = vadd.f32 %v618_v3, %v611_v44  ;;  %v621_v9 = vadd.f32 %v618_v3, %v612_v62  ;;  %v622_v12 = vadd.f32 %v618_v3, %v613_v49  ;;  %v623_v54 = vadd.f32 %v618_v3, %v614_v14 }
 0x44f   :  { %vm626_vm2 = vcmp.ge.f32.partialorder %v622_v12, 0.0  ;;  %v630_v4 = vmul.f32 0.01, %v622_v12  ;;  %vm624_vm4 = vcmp.ge.f32.partialorder %v620_v7, 0.0  ;;  %v628_v15 = vmul.f32 0.01, %v620_v7 }
 0x450   :  { %v629_v46 = vmul.f32 0.01, %v621_v9  ;;  %vm625_vm5 = vcmp.ge.f32.partialorder %v621_v9, 0.0  ;;  %v631_v63 = vmul.f32 0.01, %v623_v54  ;;  %vm627_vm9 = vcmp.ge.f32.partialorder %v623_v54, 0.0 }
 0x451   :  { %v634_v57 = vsel %vm626_vm2, %v622_v12, %v630_v4  ;;  %v632_v17 = vsel %vm624_vm4, %v620_v7, %v628_v15  ;;  %vm2005_vm2 = vcmask 1039360  }
 0x452   :  { %652 = vrot.lane.b32.xlu0 %v634_v57, %s1417_s20  ;;  %638 = vrot.lane.b32.xlu1 %v632_v17, %s1417_s20  ;;  %v633_v1 = vsel %vm625_vm5, %v621_v9, %v629_v46  ;;  %v635_v18 = vsel %vm627_vm9, %v623_v54, %v631_v63  ;;  %vm1429_vm9 = vmmov 1  }
 0x456   :  { %640 = vrot.lane.b32.xlu1 %v633_v1, %s1417_s20 }
 0x45a   :  { %654 = vrot.lane.b32.xlu1 %v635_v18, %s1417_s20 }
 0x4c4   :  { %v653_v51 = vpop.permute.xlu0 %652  ;;  %v639_v20 = vpop.permute.xlu1 %638 }
 0x4c5   :  { %661 = vst.msk [vmem:[#allocation3 + $0x18] sm:$0xff] %vm646_vm11, %v653_v51  ;;  %647 = vst.msk [vmem:[#allocation3] sm:$0xff] %vm646_vm11, %v639_v20 }
 0x4c6   :  { %vm1842_vm11 = vmpackc.low %vm1429_vm9, %vm1499_vm7 }
 0x4c8   :  { %v641_v21 = vpop.permute.xlu1 %640 }
 0x4c9   :  { %v1770_v22 = vsel %vm69_vm3, %v639_v20, %v641_v21  ;;  %649 = vst.msk [vmem:[#allocation3 + $0x10] sm:$0xff] %vm69_vm3, %v641_v21 }
 0x4cc   :  { %v655_v8 = vpop.permute.xlu1 %654  ;;  %v1777_v25 = vld [vmem:[#allocation3 + $0x18] sm:$0xff]  ;;  %v1786_v28 = vld [vmem:[#allocation3] sm:$0xff] }
 0x4cd   :  { %v1774_v23 = vsel %vm69_vm3, %v653_v51, %v655_v8  ;;  %663 = vst.msk [vmem:[#allocation3 + $0x28] sm:$0xff] %vm69_vm3, %v655_v8  ;;  %v1319_v0 = vpack.i.bf16 %v1770_v22, %v1786_v28  ;;  %vm1045_vm3 = vcmask 1043456  }
 0x4ce   :  { %v1339_v32 = vpack.i.bf16 %v1774_v23, %v1786_v28 }
 0x4d0   :  { %v806_v24 = vld [vmem:[#allocation3 + $0x10] sm:$0xff] }
 0x4d1   :  { %v1284_v26 = vpack.i.bf16 %v1777_v25, %v806_v24  ;;  %v1329_v48 = vpack.i.bf16 %v806_v24, %v1770_v22 }
 0x4d3   :  { %1285 = vrot.lane.b32.xlu1 %v1284_v26, %s1418_s0 }
 0x4d4   :  { %v948_v56 = vld [vmem:[#allocation3 + $0x28] sm:$0xff] }
 0x4d5   :  { %v1294_v27 = vpack.i.bf16 %v1777_v25, %v948_v56  ;;  %v1324_v31 = vpack.i.bf16 %v948_v56, %v1774_v23 }
 0x4d7   :  { %1295 = vrot.lane.b32.xlu0 %v1294_v27, %s1424_s28  ;;  %1290 = vrot.lane.b32.xlu1 %v1294_v27, %s1419_s23 }
 0x4db   :  { %1305 = vrot.lane.b32.xlu0 %v1294_v27, %s1420_s24  ;;  %1300 = vrot.lane.b32.xlu1 %v1294_v27, %s1422_s26 }
 0x4df   :  { %1315 = vrot.lane.b32.xlu1 %v1294_v27, %s1421_s25  ;;  %1310 = vrot.lane.b32.xlu0 %v1294_v27, %s1423_s27 }
 0x4e3   :  { %1330 = vrot.lane.b32.xlu1 %v1329_v48, %s1419_s23  ;;  %1320 = vrot.lane.b32.xlu0 %v1319_v0, %s1418_s0 }
 0x4e7   :  { %1325 = vrot.lane.b32.xlu0 %v1324_v31, %s1418_s0  ;;  %1340 = vrot.lane.b32.xlu1 %v1339_v32, %s1419_s23 }
 0x4eb   :  { %1335 = vrot.lane.b32.xlu0 %v1329_v48, %s1424_s28  ;;  %1350 = vrot.lane.b32.xlu1 %v1329_v48, %s1422_s26 }
 0x4ef   :  { %1345 = vrot.lane.b32.xlu0 %v1339_v32, %s1424_s28  ;;  %1360 = vrot.lane.b32.xlu1 %v1339_v32, %s1422_s26 }
 0x4f3   :  { %1355 = vrot.lane.b32.xlu0 %v1329_v48, %s1420_s24  ;;  %1370 = vrot.lane.b32.xlu1 %v1329_v48, %s1423_s27 }
 0x4f7   :  { %1365 = vrot.lane.b32.xlu0 %v1339_v32, %s1420_s24  ;;  %1380 = vrot.lane.b32.xlu1 %v1339_v32, %s1423_s27 }
 0x4fb   :  { %1375 = vrot.lane.b32.xlu0 %v1329_v48, %s1421_s25  ;;  %1390 = vrot.lane.b32.xlu1 %v1329_v48, %s1425_s29 }
 0x4ff   :  { %1385 = vrot.lane.b32.xlu0 %v1339_v32, %s1421_s25  ;;  %1400 = vrot.lane.b32.xlu1 %v1294_v27, %s1425_s29 }
 0x503   :  { %1395 = vrot.lane.b32.xlu0 %v1339_v32, %s1425_s29 }
 0x545   :  { %v1286_v33 = vpop.permute.xlu1 %1285 }
 0x546   :  { %v1287_v13 = vunpack.i.l.bf16 %v1286_v33  ;;  %v1288_v41 = vunpack.i.h.bf16 %v1286_v33 }
 0x549   :  { %v1813_v34 = vpop.permute.xlu0 %1295  ;;  %v1291_v35 = vpop.permute.xlu1 %1290 }
 0x54a   :  { %v1293_v1 = vunpack.i.h.bf16 %v1291_v35  ;;  %v1292_v63 = vunpack.i.l.bf16 %v1291_v35  ;;  %v1298_v8 = vunpack.i.h.bf16 %v1813_v34  ;;  %v1297_v24 = vunpack.i.l.bf16 %v1813_v34 }
 0x54d   :  { %v1815_v60 = vpop.permute.xlu0 %1305  ;;  %v1817_v50 = vpop.permute.xlu1 %1300 }
 0x551   :  { %v1819_v5 = vpop.permute.xlu0 %1310  ;;  %v1821_v6 = vpop.permute.xlu1 %1315 }
 0x555   :  { %v1321_v11 = vpop.permute.xlu0 %1320  ;;  %v1331_v10 = vpop.permute.xlu1 %1330 }
 0x556   :  { %v1323_v42 = vunpack.i.h.bf16 %v1321_v11  ;;  %v1322_v36 = vunpack.i.l.bf16 %v1321_v11  ;;  %v1333_v47 = vunpack.i.h.bf16 %v1331_v10  ;;  %v1332_v59 = vunpack.i.l.bf16 %v1331_v10 }
 0x558   :  { %v816_v37 = vsel %vm266_vm15, %v1322_v36, %v1323_v42  ;;  %v817_v58 = vsel %vm266_vm15, %v1323_v42, %v1287_v13  ;;  %v779_v57 = vsel %vm227_vm10, %v1332_v59, %v1333_v47 }
 0x559   :  { %v821_v38 = vsel %vm1668_vm14, %v817_v58, 0.0  ;;  %v1326_v53 = vpop.permute.xlu0 %1325  ;;  %v1341_v39 = vpop.permute.xlu1 %1340  ;;  %v820_v40 = vsel %vm1662_vm13, %v816_v37, 0.0 }
 0x55a   :  { %v1328_v43 = vunpack.i.h.bf16 %v1326_v53  ;;  %v1327_v2 = vunpack.i.l.bf16 %v1326_v53  ;;  %v1038_v45 = vpack.c.bf16 %v821_v38, %v821_v38  ;;  %v1037_v52 = vpack.c.bf16 %v820_v40, %v820_v40 }
 0x55b   :  { %v1343_v14 = vunpack.i.h.bf16 %v1341_v39  ;;  %v1342_v4 = vunpack.i.l.bf16 %v1341_v39 }
 0x55c   :  { %v976_v61 = vsel %vm266_vm15, %v1288_v41, %v1327_v2  ;;  %v977_v55 = vsel %vm266_vm15, %v1327_v2, %v1328_v43  ;;  %1214 = vmatprep.subr.msk.bf16.mxu0 %vm1045_vm3, %v1038_v45  ;;  %v1047_v3 = vsel %vm1045_vm3, %v1037_v52, 0  ;;  %vm1861_vm15 = vmpackc.low %vm1429_vm9, %vm1485_vm6  ;;  %v1303_v2 = vunpack.i.h.bf16 %v1817_v50 }
 0x55d   :  { %v981_v44 = vsel %vm1668_vm14, %v977_v55, 0.0  ;;  %v1336_v62 = vpop.permute.xlu0 %1335  ;;  %v1351_v49 = vpop.permute.xlu1 %1350  ;;  %v980_v7 = vsel %vm1662_vm13, %v976_v61, 0.0  ;;  %1065 = vmatpush1.bf16.msra.mxu0 %v1047_v3  ;;  %v778_v27 = vsel %vm227_vm10, %v1342_v4, %v1332_v59  ;;  %v938_v48 = vsel %vm227_vm10, %v1293_v1, %v1343_v14 }
 0x55e   :  { %v1338_v9 = vunpack.i.h.bf16 %v1336_v62  ;;  %v1337_v12 = vunpack.i.l.bf16 %v1336_v62  ;;  %v1040_v15 = vpack.c.bf16 %v981_v44, %v981_v44  ;;  %v1039_v54 = vpack.c.bf16 %v980_v7, %v980_v7 }
 0x55f   :  { %v939_v0 = vsel %vm227_vm10, %v1343_v14, %v1292_v63  ;;  %v1353_v31 = vunpack.i.h.bf16 %v1351_v49  ;;  %v1352_v32 = vunpack.i.l.bf16 %v1351_v49  ;;  %v1302_v45 = vunpack.i.l.bf16 %v1817_v50  ;;  %vm1895_vm10 = vmpackc.low %vm1662_vm13, %vm1429_vm9 }
 0x560   :  { %v799_v17 = vsel %vm248_vm8, %v1337_v12, %v1338_v9  ;;  %1216 = vmatprep.subr.msk.bf16.mxu1 %vm1045_vm3, %v1040_v15  ;;  %v1053_v21 = vsel %vm1045_vm3, %v1039_v54, 0  ;;  %v1308_v61 = vunpack.i.h.bf16 %v1815_v60  ;;  %v1307_v55 = vunpack.i.l.bf16 %v1815_v60 }
 0x561   :  { %v1221_v18 = vpack.c.bf16 %v799_v17, %v779_v57  ;;  %v1346_v51 = vpop.permute.xlu0 %1345  ;;  %v1361_v20 = vpop.permute.xlu1 %1360  ;;  %1106 = vmatpush1.bf16.msra.mxu1 %v1053_v21  ;;  %v741_v40 = vsel %vm183_vm1, %v1352_v32, %v1353_v31 }
 0x562   :  { %v1348_v26 = vunpack.i.h.bf16 %v1346_v51  ;;  %v1347_v56 = vunpack.i.l.bf16 %v1346_v51  ;;  %v1363_v53 = vunpack.i.h.bf16 %v1361_v20  ;;  %v1362_v39 = vunpack.i.l.bf16 %v1361_v20 }
 0x563   :  { %1222 = vmatprep.subr.msk.bf16.mxu0 %vm1842_vm11, %v1221_v18 }
 0x564   :  { %v958_v33 = vsel %vm248_vm8, %v1298_v8, %v1348_v26  ;;  %v959_v35 = vsel %vm248_vm8, %v1348_v26, %v1297_v24  ;;  %v798_v34 = vsel %vm248_vm8, %v1347_v56, %v1337_v12  ;;  %vm1876_vm8 = vmpackc.low %vm1668_vm14, %vm1429_vm9  ;;  %v740_v49 = vsel %vm183_vm1, %v1362_v39, %v1352_v32 }
 0x565   :  { %v1224_v10 = vpack.c.bf16 %v798_v34, %v778_v27  ;;  %v1245_v13 = vpack.c.bf16 %v959_v35, %v939_v0  ;;  %v1248_v42 = vpack.c.bf16 %v958_v33, %v938_v48  ;;  %v1356_v36 = vpop.permute.xlu0 %1355  ;;  %v1371_v37 = vpop.permute.xlu1 %1370  ;;  %v900_v3 = vsel %vm183_vm1, %v1303_v2, %v1363_v53  ;;  %vm1235_vm9 = vmpackc.low %vm1485_vm6, %vm1662_vm13 }
 0x566   :  { %v1358_v58 = vunpack.i.h.bf16 %v1356_v36  ;;  %v1357_v38 = vunpack.i.l.bf16 %v1356_v36  ;;  %v901_v7 = vsel %vm183_vm1, %v1363_v53, %v1302_v45  ;;  %v1373_v9 = vunpack.i.h.bf16 %v1371_v37  ;;  %vm1232_vm1 = vmpackc.low %vm1499_vm7, %vm1668_vm14 }
 0x567   :  { %1225 = vmatpush1.bf16.msk.msra.mxu0 %vm1861_vm15, %v1224_v10  ;;  %1246 = vmatprep.subr.msk.bf16.mxu1 %vm1842_vm11, %v1245_v13  ;;  %v1372_v50 = vunpack.i.l.bf16 %v1371_v37  ;;  %v1313_v56 = vunpack.i.h.bf16 %v1819_v5  ;;  %v1312_v27 = vunpack.i.l.bf16 %v1819_v5  ;;  %v1318_v48 = vunpack.i.h.bf16 %v1821_v6 }
 0x568   :  { %v759_v41 = vsel %vm201_vm12, %v1357_v38, %v1358_v58  ;;  %1249 = vmatpush1.bf16.msk.msra.mxu1 %vm1861_vm15, %v1248_v42  ;;  %v1317_v32 = vunpack.i.l.bf16 %v1821_v6  ;;  %vm1041_vm7 = vcmask 588800  }
 0x569   :  { %v1227_v52 = vpack.c.bf16 %v759_v41, %v741_v40  ;;  %v1366_v47 = vpop.permute.xlu0 %1365  ;;  %v1381_v59 = vpop.permute.xlu1 %1380  ;;  %v701_v8 = vsel %vm137_vm0, %v1372_v50, %v1373_v9 }
 0x56a   :  { %v1368_v44 = vunpack.i.h.bf16 %v1366_v47  ;;  %v1367_v62 = vunpack.i.l.bf16 %v1366_v47  ;;  %v1383_v20 = vunpack.i.h.bf16 %v1381_v59  ;;  %v1382_v24 = vunpack.i.l.bf16 %v1381_v59 }
 0x56b   :  { %1228 = vmatprep.subr.msk.bf16.mxu0 %vm1876_vm8, %v1227_v52 }
 0x56c   :  { %v918_v12 = vsel %vm201_vm12, %v1308_v61, %v1368_v44  ;;  %v919_v14 = vsel %vm201_vm12, %v1368_v44, %v1307_v55  ;;  %v758_v4 = vsel %vm201_vm12, %v1367_v62, %v1357_v38  ;;  %vm2004_vm12 = vcmask 916480  }
 0x56d   :  { %v1230_v15 = vpack.c.bf16 %v758_v4, %v740_v49  ;;  %v1251_v54 = vpack.c.bf16 %v919_v14, %v901_v7  ;;  %v1254_v57 = vpack.c.bf16 %v918_v12, %v900_v3  ;;  %v1376_v17 = vpop.permute.xlu0 %1375  ;;  %v1391_v1 = vpop.permute.xlu1 %1390  ;;  %v860_v10 = vsel %vm137_vm0, %v1313_v56, %v1383_v20  ;;  %vm2006_vm4 = vmmov %vm2004_vm12 }
 0x56e   :  { %v1378_v63 = vunpack.i.h.bf16 %v1376_v17  ;;  %v1377_v18 = vunpack.i.l.bf16 %v1376_v17  ;;  %v1393_v51 = vunpack.i.h.bf16 %v1391_v1  ;;  %v1392_v21 = vunpack.i.l.bf16 %v1391_v1  ;;  %vm2007_vm5 = vmmov %vm2006_vm4 }
 0x56f   :  { %1231 = vmatpush1.bf16.msk.msra.mxu0 %vm1895_vm10, %v1230_v15  ;;  %1252 = vmatprep.subr.msk.bf16.mxu1 %vm1876_vm8, %v1251_v54  ;;  %v861_v13 = vsel %vm137_vm0, %v1383_v20, %v1312_v27  ;;  %v700_v5 = vsel %vm137_vm0, %v1382_v24, %v1372_v50  ;;  %vm2008_vm3 = vmmov %vm2006_vm4  ;;  %v1140_v20 = vld [vmem:[%s1984_s4] sm:$0xff] }
 0x570   :  { %v721_v26 = vsel %vm2004_vm12, %v1377_v18, %v1378_v63  ;;  %1255 = vmatpush1.bf16.msk.msra.mxu1 %vm1895_vm10, %v1254_v57  ;;  %v683_v33 = vsel %vm2005_vm2, %v1392_v21, %v1393_v51  ;;  %vm2009_vm0 = vmmov %vm2005_vm2 }
 0x571   :  { %v1233_v0 = vpack.c.bf16 %v721_v26, %v701_v8  ;;  %v1386_v31 = vpop.permute.xlu0 %1385  ;;  %v1401_v42 = vpop.permute.xlu1 %1400  ;;  %v1239_v58 = vpack.c.bf16 %v683_v33, %v1770_v22  ;;  %vm2010_vm8 = vmmov %vm2009_vm0 }
 0x572   :  { %v1388_v35 = vunpack.i.h.bf16 %v1386_v31  ;;  %v1387_v34 = vunpack.i.l.bf16 %v1386_v31  ;;  %v1403_v41 = vunpack.i.h.bf16 %v1401_v42  ;;  %v1402_v43 = vunpack.i.l.bf16 %v1401_v42  ;;  %vm2011_vm10 = vmmov %vm2009_vm0 }
 0x573   :  { %1234 = vmatprep.subr.msk.bf16.mxu0 %vm1232_vm1, %v1233_v0 }
 0x574   :  { %v720_v36 = vsel %vm2006_vm4, %v1387_v34, %v1377_v18  ;;  %v880_v6 = vsel %vm2007_vm5, %v1318_v48, %v1388_v35  ;;  %v881_v37 = vsel %vm2008_vm3, %v1388_v35, %v1317_v32 }
 0x575   :  { %v1236_v38 = vpack.c.bf16 %v720_v36, %v700_v5  ;;  %v1257_v53 = vpack.c.bf16 %v881_v37, %v861_v13  ;;  %v1260_v39 = vpack.c.bf16 %v880_v6, %v860_v10  ;;  %v1396_v40 = vpop.permute.xlu0 %1395 }
 0x576   :  { %v1398_v2 = vunpack.i.h.bf16 %v1396_v40  ;;  %v1397_v45 = vunpack.i.l.bf16 %v1396_v40 }
 0x577   :  { %1237 = vmatpush1.bf16.msk.msra.mxu0 %vm1235_vm9, %v1236_v38  ;;  %1258 = vmatprep.subr.msk.bf16.mxu1 %vm1232_vm1, %v1257_v53 }
 0x578   :  { %v682_v22 = vsel %vm2009_vm0, %v1397_v45, %v1392_v21  ;;  %v842_v52 = vsel %vm2010_vm8, %v1403_v41, %v1398_v2  ;;  %v843_v47 = vsel %vm2011_vm10, %v1398_v2, %v1402_v43  ;;  %1240 = vmatprep.subr.msk.bf16.mxu0 %vm1842_vm11, %v1239_v58  ;;  %1261 = vmatpush1.bf16.msk.msra.mxu1 %vm1235_vm9, %v1260_v39 }
 0x579   :  { %v1242_v19 = vpack.c.bf16 %v682_v22, %v1786_v28  ;;  %v1263_v30 = vpack.c.bf16 %v843_v47, %v1774_v23  ;;  %v1266_v59 = vpack.c.bf16 %v842_v52, %v1777_v25 }
 0x57b   :  { %1243 = vmatpush1.bf16.msk.msra.mxu0 %vm1861_vm15, %v1242_v19  ;;  %1264 = vmatprep.subr.msk.bf16.mxu1 %vm1842_vm11, %v1263_v30 }
 0x57c   :  { %1267 = vmatpush1.bf16.msk.msra.mxu1 %vm1861_vm15, %v1266_v59 }
 0x57e   :  { %1215 = vmatmul.mubr.msk.bf16.vlgmr.msra.gmra.mxu0 %vm1041_vm7, %v984_v16 }
 0x57f   :  { %1217 = vmatmul.mubr.msk.bf16.vlgmr.msra.gmra.mxu1 %vm1041_vm7, %v984_v16 }
 0x63e   :  { %v1092_v29 = vpop.f32.mrf.mxu0 }
 0x63f   :  { %v1133_v23 = vpop.f32.mrf.mxu1 }
 0x640   :  { %v1094_v28 = vpop.f32.mrf.mxu0 }
 0x641   :  { %v1141_v25 = vadd.f32 %v1094_v28, %v1092_v29  ;;  %v1135_v61 = vpop.f32.mrf.mxu1 }
 0x642   :  { %v1096_v55 = vpop.f32.mrf.mxu0 }
 0x643   :  { %v1137_v44 = vpop.f32.mrf.mxu1  ;;  %v1142_v62 = vadd.f32 %v1141_v25, %v1133_v23 }
 0x644   :  { %v1097_v46 = vpop.f32.mrf.mxu0 }
 0x645   :  { %v1138_v49 = vpop.f32.mrf.mxu1  ;;  %v1143_v3 = vadd.f32 %v1142_v62, %v1135_v61 }
 0x647   :  { %1144 = vadd.xlane.f32.xlu0 %v1143_v3 }
 0x6d0   :  { %v1145_v7 = vpop.xlane.xlu0 %1144 }
 0x6d1   :  { %v1146_v9 = vmul.f32 0.001953125, %v1145_v7 }
 0x6d3   :  { %v1147_v50 = vsub.f32 %v1092_v29, %v1146_v9  ;;  %v1148_v12 = vsub.f32 %v1094_v28, %v1146_v9  ;;  %v1149_v11 = vsub.f32 %v1133_v23, %v1146_v9  ;;  %v1150_v14 = vsub.f32 %v1135_v61, %v1146_v9 }
 0x6d5   :  { %v1151_v4 = vmul.f32 %v1147_v50, %v1147_v50  ;;  %v1152_v60 = vmul.f32 %v1148_v12, %v1148_v12  ;;  %v1153_v15 = vmul.f32 %v1149_v11, %v1149_v11  ;;  %v1154_v57 = vmul.f32 %v1150_v14, %v1150_v14 }
 0x6d7   :  { %v1155_v54 = vadd.f32 %v1152_v60, %v1151_v4 }
 0x6d9   :  { %v1156_v17 = vadd.f32 %v1155_v54, %v1153_v15 }
 0x6db   :  { %v1157_v1 = vadd.f32 %v1156_v17, %v1154_v57 }
 0x6dd   :  { %1158 = vadd.xlane.f32.xlu1 %v1157_v1 }
 0x766   :  { %v1159_v63 = vpop.xlane.xlu1 %1158 }
 0x767   :  { %v1160_v18 = vmul.f32 0.001953125, %v1159_v63 }
 0x769   :  { %v1161_v51 = vadd.f32 1e-05, %v1160_v18 }
 0x76b   :  { %1414 = vrsqrt.f32 %v1161_v51 }
 0x778   :  { %v1415_v21 = vpop.eup %1414 }
 0x779   :  { %v1163_v8 = vmul.f32 %v1415_v21, %v1140_v20 }
 0x77b   :  { %1172 = vperm.xlu1 %1282, %v1163_v8   ;;  %v1164_v24 = vmul.f32 %v1163_v8, %v1146_v9 }
 0x77d   :  { %1166 = vrot.lane.b32.xlu0 %v1164_v24, %s1428_s8 }
 0x7ef   :  { %v1167_v26 = vpop.permute.xlu0 %1166 }
 0x7f0   :  { %v1169_v56 = vsub.f32 %v1140_v20, %v1167_v26 }
 0x7f2   :  { %1181 = vperm.xlu0 %1283, %v1169_v56  }
 0x7f6   :  { %v1173_v27 = vpop.permute.xlu1 %1172 }
 0x7f7   :  { %v1175_v48 = vmul.f32 %v1173_v27, %v1092_v29  ;;  %v1176_v0 = vmul.f32 %v1173_v27, %v1094_v28  ;;  %v1177_v31 = vmul.f32 %v1173_v27, %v1133_v23  ;;  %v1178_v32 = vmul.f32 %v1173_v27, %v1135_v61 }
 0x86d   :  { %v1182_v33 = vpop.permute.xlu0 %1181 }
 0x86e   :  { %v1184_v35 = vadd.f32 %v1182_v33, %v1175_v48  ;;  %v1185_v34 = vadd.f32 %v1182_v33, %v1176_v0  ;;  %v1186_v10 = vadd.f32 %v1182_v33, %v1177_v31  ;;  %v1187_v13 = vadd.f32 %v1182_v33, %v1178_v32 }
 0x870   :  { %vm1188_vm6 = vcmp.ge.f32.partialorder %v1184_v35, 0.0  ;;  %vm1189_vm13 = vcmp.ge.f32.partialorder %v1185_v34, 0.0  ;;  %vm1190_vm14 = vcmp.ge.f32.partialorder %v1186_v10, 0.0  ;;  %vm1191_vm11 = vcmp.ge.f32.partialorder %v1187_v13, 0.0 }
 0x871   :  { %v1192_v42 = vmul.f32 0.01, %v1184_v35  ;;  %v1193_v5 = vmul.f32 0.01, %v1185_v34  ;;  %v1194_v36 = vmul.f32 0.01, %v1186_v10 }
 0x872   :  { %v1195_v6 = vmul.f32 0.01, %v1187_v13 }
 0x873   :  { %v1196_v37 = vsel %vm1188_vm6, %v1184_v35, %v1192_v42  ;;  %v1197_v58 = vsel %vm1189_vm13, %v1185_v34, %v1193_v5  ;;  %v1198_v38 = vsel %vm1190_vm14, %v1186_v10, %v1194_v36 }
 0x874   :  { %v1199_v53 = vsel %vm1191_vm11, %v1187_v13, %v1195_v6  ;;  %1200 = vst [vmem:[%s1985_s5] sm:$0xff] %v1196_v37  ;;  %1201 = vst [vmem:[%s1985_s5 + $0x8] sm:$0xff] %v1197_v58 }
 0x875   :  { %1218 = vst [vmem:[%s1985_s5 + $0x10] sm:$0xff] %v1198_v38  ;;  %1219 = vst [vmem:[%s1985_s5 + $0x18] sm:$0xff] %v1199_v53 }

</bundles_post_ra>
